<compile_context>
chip_gen: v7x
topology: tpu7x:2x2x1
jax: 0.10.0
libtpu: 0.0.40
codegen_flags: <defaults>
</compile_context>

<pallas_src>
import functools

import jax
import jax.numpy as jnp
from jax.experimental import pallas as pl
from jax.experimental.pallas import tpu as pltpu

# Task output channel counts (synthetic stand-in for N_OUTPUTS in the repo).
N_OUTPUTS = {"semseg": 5, "depth": 1}


def _round_up(x, m):
    return ((x + m - 1) // m) * m


# ----------------------------------------------------------------------------
# Pallas kernel: tiled  O = act(A @ B [+ bias])  with f32 VMEM accumulator
# ----------------------------------------------------------------------------
def _gemm_kernel(a_ref, b_ref, o_ref, acc_ref, *, relu):
    @pl.when(pl.program_id(2) == 0)
    def _init():
        acc_ref[...] = jnp.zeros_like(acc_ref)

    acc_ref[...] += jnp.dot(a_ref[...], b_ref[...],
                            preferred_element_type=jnp.float32)

    @pl.when(pl.program_id(2) == pl.num_programs(2) - 1)
    def _finalize():
        acc = acc_ref[...]
        if relu:
            acc = jnp.maximum(acc, 0.0)
        o_ref[...] = acc.astype(o_ref.dtype)


def _gemm_bias_kernel(a_ref, b_ref, bias_ref, o_ref, acc_ref, *, relu):
    @pl.when(pl.program_id(2) == 0)
    def _init():
        acc_ref[...] = jnp.zeros_like(acc_ref)

    acc_ref[...] += jnp.dot(a_ref[...], b_ref[...],
                            preferred_element_type=jnp.float32)

    @pl.when(pl.program_id(2) == pl.num_programs(2) - 1)
    def _finalize():
        acc = acc_ref[...] + bias_ref[...]            # (1, tn) broadcasts over rows
        if relu:
            acc = jnp.maximum(acc, 0.0)
        o_ref[...] = acc.astype(o_ref.dtype)


def gemm_bias_act(a, b, bias=None, relu=False, out_dtype=jnp.float32,
                  tm=256, tn=256, tk=512):
    """O = act(A @ B [+ bias]).  A:(M,K), B:(K,N), bias:(N,) or None.

    Operands are fed to the MXU as bf16 with f32 accumulation in a VMEM
    scratch.  The grid is (M/tm, N/tn, K/tk), reduction axis last; M/N axes
    are 'parallel' so the grid shards across TensorCores on v7x.
    """
    M, K = a.shape
    K2, N = b.shape
    assert K == K2
    # Shrink tiles to the (padded) problem while keeping lane/sublane alignment
    # (sublane rounded to 16 so bf16 blocks are always natively tileable).
    tm = min(tm, _round_up(M, 16))
    tn = min(tn, _round_up(N, 128))
    tk = min(tk, _round_up(K, 128))
    Mp, Kp, Np = _round_up(M, tm), _round_up(K, tk), _round_up(N, tn)

    a_p = jnp.pad(a, ((0, Mp - M), (0, Kp - K))).astype(jnp.bfloat16)
    b_p = jnp.pad(b, ((0, Kp - K), (0, Np - N))).astype(jnp.bfloat16)

    grid = (Mp // tm, Np // tn, Kp // tk)
    in_specs = [
        pl.BlockSpec((tm, tk), lambda i, j, k: (i, k)),
        pl.BlockSpec((tk, tn), lambda i, j, k: (k, j)),
    ]
    operands = [a_p, b_p]
    out_bytes = Mp * Np * jnp.dtype(out_dtype).itemsize
    bytes_accessed = a_p.size * 2 + b_p.size * 2 + out_bytes
    if bias is not None:
        bias_p = jnp.pad(bias.astype(jnp.float32), (0, Np - N)).reshape(1, Np)
        in_specs.append(pl.BlockSpec((1, tn), lambda i, j, k: (0, j)))
        operands.append(bias_p)
        bytes_accessed += bias_p.size * 4
        kernel = functools.partial(_gemm_bias_kernel, relu=relu)
    else:
        kernel = functools.partial(_gemm_kernel, relu=relu)

    out = pl.pallas_call(
        kernel,
        out_shape=jax.ShapeDtypeStruct((Mp, Np), out_dtype),
        grid_spec=pltpu.PrefetchScalarGridSpec(
            num_scalar_prefetch=0,
            grid=grid,
            in_specs=in_specs,
            out_specs=pl.BlockSpec((tm, tn), lambda i, j, k: (i, j)),
            scratch_shapes=[pltpu.VMEM((tm, tn), jnp.float32)],
        ),
        compiler_params=pltpu.CompilerParams(
            dimension_semantics=("parallel", "parallel", "arbitrary"),
            vmem_limit_bytes=32 * 1024 * 1024,
        ),
        cost_estimate=pl.CostEstimate(
            flops=int(2 * Mp * Np * Kp),
            transcendentals=0,
            bytes_accessed=int(bytes_accessed)),
    )(*operands)
    return out[:M, :N]


# ----------------------------------------------------------------------------
# Conv2d = im2col / reshape (glue) + tiled Pallas GEMM (hot path)
# ----------------------------------------------------------------------------
def conv2d_nhwc(x, w_oikk, b, stride, pad, relu, out_dtype=jnp.float32):
    """x: (N,H,W,Cin) -> (N,Hout,Wout,Cout).  w_oikk: PyTorch (Cout,Cin,kh,kw)."""
    Cout, Cin, kh, kw = w_oikk.shape
    N, H, W, C = x.shape
    assert C == Cin
    Hout = (H + 2 * pad - kh) // stride + 1
    Wout = (W + 2 * pad - kw) // stride + 1
    wmat = jnp.transpose(w_oikk, (2, 3, 1, 0)).reshape(kh * kw * Cin, Cout)
    if kh == 1 and kw == 1 and pad == 0 and stride == 1:
        a = x.reshape(N * H * W, Cin)                 # 1x1 conv: pure GEMM
    else:
        # TODO(synk): implicit-GEMM (in-kernel kh*kw reduction axis with
        # element-offset index maps) would avoid materializing the 9x-inflated
        # im2col patches in HBM; kept as plain-JAX im2col feeding the tiled
        # Pallas GEMM for simplicity at these sizes.
        xp = jnp.pad(x, ((0, 0), (pad, pad), (pad, pad), (0, 0)))
        cols = []
        for dy in range(kh):
            for dx in range(kw):
                cols.append(
                    xp[:, dy: dy + (Hout - 1) * stride + 1: stride,
                          dx: dx + (Wout - 1) * stride + 1: stride, :])
        a = jnp.concatenate(cols, axis=-1).reshape(N * Hout * Wout, kh * kw * Cin)
    y = gemm_bias_act(a, wmat, b, relu=relu, out_dtype=out_dtype)
    return y.reshape(N, Hout, Wout, Cout)


# ----------------------------------------------------------------------------
# Bilinear resize (align_corners=False, PyTorch default) as two Pallas GEMMs
# ----------------------------------------------------------------------------
def _interp_matrix(out_size, in_size):
    scale = in_size / out_size
    dst = jnp.arange(out_size, dtype=jnp.float32)
    src = jnp.clip((dst + 0.5) * scale - 0.5, 0.0, float(in_size - 1))
    lo = jnp.floor(src).astype(jnp.int32)
    hi = jnp.minimum(lo + 1, in_size - 1)
    frac = src - lo.astype(jnp.float32)
    R = jnp.zeros((out_size, in_size), jnp.float32)
    R = R.at[jnp.arange(out_size), lo].add(1.0 - frac)
    R = R.at[jnp.arange(out_size), hi].add(frac)
    return R


def bilinear_resize_nhwc_to_nchw(x, Hout, Wout, out_dtype=jnp.float32):
    """Bilinear (align_corners=False) resize of NHWC x; returns NCHW output.

    Both passes are right-multiplies (x @ R^T), bias-free, and the W-pass
    result lands directly in NCHW layout (no extra transpose at the end).
    """
    N, Hin, Win, C = x.shape
    RhT = _interp_matrix(Hout, Hin).T     # (Hin, Hout)
    RwT = _interp_matrix(Wout, Win).T     # (Win, Wout)
    # H pass: contract over Hin.
    t = jnp.transpose(x, (0, 2, 3, 1)).reshape(N * Win * C, Hin)
    t = gemm_bias_act(t, RhT, bias=None, relu=False, out_dtype=jnp.float32)
    t = t.reshape(N, Win, C, Hout)
    # W pass: contract over Win; output is (N, C, Hout, Wout) = NCHW.
    u = jnp.transpose(t, (0, 2, 3, 1)).reshape(N * C * Hout, Win)
    u = gemm_bias_act(u, RwT, bias=None, relu=False, out_dtype=out_dtype)
    return u.reshape(N, C, Hout, Wout)


# ----------------------------------------------------------------------------
# Parameters (deterministic synthetic init, PyTorch weight layout)
# ----------------------------------------------------------------------------
def init_params(key, n_channels, tasks, mid=16, backbone_channels=32, head_mid=32):
    def conv_init(k, cout, cin, kh, kw):
        fan_in = cin * kh * kw
        w = jax.random.normal(k, (cout, cin, kh, kw), jnp.float32) * (2.0 / fan_in) ** 0.5
        b = jnp.zeros((cout,), jnp.float32)
        return w, b

    keys = iter(jax.random.split(key, 2 + 2 * len(tasks)))
    params = {}
    params["bb1_w"], params["bb1_b"] = conv_init(next(keys), mid, n_channels, 3, 3)
    params["bb2_w"], params["bb2_b"] = conv_init(next(keys), backbone_channels, mid, 3, 3)
    heads = {}
    for task in tasks:
        w1, b1 = conv_init(next(keys), head_mid, backbone_channels, 3, 3)
        w2, b2 = conv_init(next(keys), N_OUTPUTS[task], head_mid, 1, 1)
        heads[task] = {"w1": w1, "b1": b1, "w2": w2, "b2": b2}
    params["heads"] = heads
    return params


def _fuse_heads(heads, tasks):
    """Concatenate per-task 3x3 conv1 weights along Cout and build a
    block-diagonal 1x1 conv2 so all task decoders run as two (lane-denser)
    fused GEMMs.  Mathematically identical to running each head separately."""
    w1 = jnp.concatenate([heads[t]["w1"] for t in tasks], axis=0)
    b1 = jnp.concatenate([heads[t]["b1"] for t in tasks], axis=0)
    head_mid = heads[tasks[0]]["w1"].shape[0]
    outs = [N_OUTPUTS[t] for t in tasks]
    total_out, total_mid = sum(outs), head_mid * len(tasks)
    w2 = jnp.zeros((total_out, total_mid, 1, 1), jnp.float32)
    o0 = 0
    for i, t in enumerate(tasks):
        o1 = o0 + outs[i]
        w2 = w2.at[o0:o1, i * head_mid:(i + 1) * head_mid].set(heads[t]["w2"])
        o0 = o1
    b2 = jnp.concatenate([heads[t]["b2"] for t in tasks], axis=0)
    splits, o0 = [], 0
    for n in outs:
        splits.append((o0, o0 + n))
        o0 += n
    return w1, b1, w2, b2, splits


# ----------------------------------------------------------------------------
# MultiTaskModel forward: shared encoder -> fused task decoders -> upsample
# ----------------------------------------------------------------------------
def multi_task_model_forward(x_nchw, params, tasks):
    x = jnp.transpose(x_nchw, (0, 2, 3, 1)).astype(jnp.float32)   # NCHW -> NHWC
    out_h, out_w = x.shape[1], x.shape[2]                         # out_size = x.size()[2:]

    # TODO(synk): backbone simplified to a 2-layer strided conv encoder (stride-4
    # shared representation) instead of pretrained resnet18/hrnet; DeepLab head
    # simplified to conv3x3+ReLU -> conv1x1 (no ASPP / BatchNorm running stats).
    h = conv2d_nhwc(x, params["bb1_w"], params["bb1_b"], stride=2, pad=1,
                    relu=True, out_dtype=jnp.bfloat16)
    h = conv2d_nhwc(h, params["bb2_w"], params["bb2_b"], stride=2, pad=1,
                    relu=True, out_dtype=jnp.bfloat16)

    # Task-fused decoders (single 3x3 GEMM + block-diagonal 1x1 GEMM).
    w1, b1, w2, b2, splits = _fuse_heads(params["heads"], tasks)
    y = conv2d_nhwc(h, w1, b1, stride=1, pad=1, relu=True, out_dtype=jnp.bfloat16)
    y = conv2d_nhwc(y, w2, b2, stride=1, pad=0, relu=False, out_dtype=jnp.bfloat16)

    # Fused bilinear upsample of all task channels at once (NCHW output).
    up = bilinear_resize_nhwc_to_nchw(y, out_h, out_w, out_dtype=jnp.float32)

    return {task: up[:, s0:s1] for task, (s0, s1) in zip(tasks, splits)}


if __name__ == "__main__":
    tasks = ["semseg", "depth"]
    batch, n_channels, H, W = 2, 3, 16, 16

    key = jax.random.PRNGKey(0)
    k_in, k_par = jax.random.split(key)
    x = jax.random.normal(k_in, (batch, n_channels, H, W), jnp.float32)
    params = init_params(k_par, n_channels, tasks)

    fwd = jax.jit(functools.partial(multi_task_model_forward, tasks=tasks))
    outs = fwd(x, params)
    outs = jax.tree_util.tree_map(jax.block_until_ready, outs)

    assert outs["semseg"].shape == (batch, N_OUTPUTS["semseg"], H, W)
    assert outs["depth"].shape == (batch, N_OUTPUTS["depth"], H, W)
    assert all(bool(jnp.isfinite(v).all()) for v in outs.values())
    print("KERNEL_OK")
</pallas_src>

<mosaic_0001>
module attributes {stable_mosaic.version = 11 : i64} {
  func.func private @main(%arg0: i32) attributes {dimension_semantics = [#tpu.dimension_semantics<core_parallel>], iteration_bounds = array<i64: 2>, tpu.core_type = #tpu.core_type<sc_scalar_subcore>, window_params = []} {
    return
  }
}

module attributes {stable_mosaic.version = 11 : i64} {
  func.func private @main(%arg0: i32) attributes {dimension_semantics = [#tpu.dimension_semantics<core_parallel>], iteration_bounds = array<i64: 2>, tpu.core_type = #tpu.core_type<sc_scalar_subcore>, window_params = []} {
    return
  }
}

module attributes {stable_mosaic.version = 11 : i64} {
  func.func @_gemm_bias_kernel(%arg0: i32, %arg1: i32, %arg2: i32, %arg3: memref<128x128xbf16, #tpu.memory_space<vmem>>, %arg4: memref<128x128xbf16, #tpu.memory_space<vmem>>, %arg5: memref<1x128xf32, #tpu.memory_space<vmem>>, %arg6: memref<128x128xbf16, #tpu.memory_space<vmem>>, %arg7: memref<128x128xf32, #tpu.memory_space<vmem>>) attributes {dimension_semantics = [#tpu.dimension_semantics<parallel>, #tpu.dimension_semantics<parallel>, #tpu.dimension_semantics<arbitrary>], iteration_bounds = array<i64: 1, 1, 1>, scalar_prefetch = 0 : i64, scratch_operands = 1 : i64, tpu.core_type = #tpu.core_type<tc>, window_params = [{transform_indices = @transform_0, window_bounds = array<i64: 128, 128>}, {transform_indices = @transform_1, window_bounds = array<i64: 128, 128>}, {transform_indices = @transform_2, window_bounds = array<i64: 1, 128>}, {transform_indices = @transform_3, window_bounds = array<i64: 128, 128>}]} {
    %c0_i32 = arith.constant 0 : i32
    %0 = arith.cmpi eq, %arg2, %c0_i32 : i32
    %1 = arith.extui %0 : i1 to i32
    %c0_i32_0 = arith.constant 0 : i32
    %2 = arith.cmpi ne, %1, %c0_i32_0 : i32
    scf.if %2 {
      %cst_10 = arith.constant 0.000000e+00 : f32
      %12 = vector.broadcast %cst_10 : f32 to vector<128x128xf32>
      %c0_11 = arith.constant 0 : index
      %c0_12 = arith.constant 0 : index
      %13 = vector.load %arg7[%c0_11, %c0_12] : memref<128x128xf32, #tpu.memory_space<vmem>>, vector<128x128xf32>
      tpu.vector_store %arg7[%c0_11, %c0_12], %12 {strides = array<i32>} : memref<128x128xf32, #tpu.memory_space<vmem>>, vector<128x128xf32>,
    } else {
    }
    %c0 = arith.constant 0 : index
    %c0_1 = arith.constant 0 : index
    %3 = vector.load %arg7[%c0, %c0_1] : memref<128x128xf32, #tpu.memory_space<vmem>>, vector<128x128xf32>
    %c0_2 = arith.constant 0 : index
    %c0_3 = arith.constant 0 : index
    %4 = vector.load %arg3[%c0_2, %c0_3] : memref<128x128xbf16, #tpu.memory_space<vmem>>, vector<128x128xbf16>
    %c0_4 = arith.constant 0 : index
    %c0_5 = arith.constant 0 : index
    %5 = vector.load %arg4[%c0_4, %c0_5] : memref<128x128xbf16, #tpu.memory_space<vmem>>, vector<128x128xbf16>
    %cst = arith.constant dense<0.000000e+00> : vector<128x128xf32>
    %6 = tpu.matmul %4, %5, %cst {dimension_numbers = #tpu.dot_dimension_numbers<[1], [0], [0], [1], [0, 0, 1, 1], [], []>} : vector<128x128xbf16>, vector<128x128xbf16>, vector<128x128xf32> -> vector<128x128xf32>
    %7 = arith.addf %3, %6 : vector<128x128xf32>
    %c0_6 = arith.constant 0 : index
    %c0_7 = arith.constant 0 : index
    %8 = vector.load %arg7[%c0_6, %c0_7] : memref<128x128xf32, #tpu.memory_space<vmem>>, vector<128x128xf32>
    tpu.vector_store %arg7[%c0_6, %c0_7], %7 {strides = array<i32>} : memref<128x128xf32, #tpu.memory_space<vmem>>, vector<128x128xf32>,
    %c0_i32_8 = arith.constant 0 : i32
    %9 = arith.cmpi eq, %arg2, %c0_i32_8 : i32
    %10 = arith.extui %9 : i1 to i32
    %c0_i32_9 = arith.constant 0 : i32
    %11 = arith.cmpi ne, %10, %c0_i32_9 : i32
    scf.if %11 {
      %c0_10 = arith.constant 0 : index
      %c0_11 = arith.constant 0 : index
      %12 = vector.load %arg7[%c0_10, %c0_11] : memref<128x128xf32, #tpu.memory_space<vmem>>, vector<128x128xf32>
      %c0_12 = arith.constant 0 : index
      %c0_13 = arith.constant 0 : index
      %13 = vector.load %arg5[%c0_12, %c0_13] : memref<1x128xf32, #tpu.memory_space<vmem>>, vector<1x128xf32>
      %14 = vector.broadcast %13 : vector<1x128xf32> to vector<128x128xf32>
      %15 = arith.addf %12, %14 : vector<128x128xf32>
      %cst_14 = arith.constant 0.000000e+00 : f32
      %16 = vector.broadcast %cst_14 : f32 to vector<128x128xf32>
      %17 = arith.maximumf %15, %16 : vector<128x128xf32>
      %18 = arith.truncf %17 : vector<128x128xf32> to vector<128x128xbf16>
      %c0_15 = arith.constant 0 : index
      %c0_16 = arith.constant 0 : index
      %19 = vector.load %arg6[%c0_15, %c0_16] : memref<128x128xbf16, #tpu.memory_space<vmem>>, vector<128x128xbf16>
      tpu.vector_store %arg6[%c0_15, %c0_16], %18 {strides = array<i32>} : memref<128x128xbf16, #tpu.memory_space<vmem>>, vector<128x128xbf16>,
    } else {
    }
    return
  }
  func.func @transform_0(%arg0: i32, %arg1: i32, %arg2: i32) -> (i32, i32) {
    %c0_i32 = arith.constant 0 : i32
    return %arg0, %arg2 : i32, i32
  }
  func.func @transform_1(%arg0: i32, %arg1: i32, %arg2: i32) -> (i32, i32) {
    %c0_i32 = arith.constant 0 : i32
    return %arg2, %arg1 : i32, i32
  }
  func.func @transform_2(%arg0: i32, %arg1: i32, %arg2: i32) -> (i32, i32) {
    %c0_i32 = arith.constant 0 : i32
    %c0_i32_0 = arith.constant 0 : i32
    return %c0_i32, %arg1 : i32, i32
  }
  func.func @transform_3(%arg0: i32, %arg1: i32, %arg2: i32) -> (i32, i32) {
    %c0_i32 = arith.constant 0 : i32
    return %arg0, %arg1 : i32, i32
  }
}

module attributes {stable_mosaic.version = 11 : i64} {
  func.func @_gemm_bias_kernel(%arg0: i32, %arg1: i32, %arg2: i32, %arg3: memref<32x256xbf16, #tpu.memory_space<vmem>>, %arg4: memref<256x128xbf16, #tpu.memory_space<vmem>>, %arg5: memref<1x128xf32, #tpu.memory_space<vmem>>, %arg6: memref<32x128xbf16, #tpu.memory_space<vmem>>, %arg7: memref<32x128xf32, #tpu.memory_space<vmem>>) attributes {dimension_semantics = [#tpu.dimension_semantics<parallel>, #tpu.dimension_semantics<parallel>, #tpu.dimension_semantics<arbitrary>], iteration_bounds = array<i64: 1, 1, 1>, scalar_prefetch = 0 : i64, scratch_operands = 1 : i64, tpu.core_type = #tpu.core_type<tc>, window_params = [{transform_indices = @transform_0, window_bounds = array<i64: 32, 256>}, {transform_indices = @transform_1, window_bounds = array<i64: 256, 128>}, {transform_indices = @transform_2, window_bounds = array<i64: 1, 128>}, {transform_indices = @transform_3, window_bounds = array<i64: 32, 128>}]} {
    %c0_i32 = arith.constant 0 : i32
    %0 = arith.cmpi eq, %arg2, %c0_i32 : i32
    %1 = arith.extui %0 : i1 to i32
    %c0_i32_0 = arith.constant 0 : i32
    %2 = arith.cmpi ne, %1, %c0_i32_0 : i32
    scf.if %2 {
      %cst_10 = arith.constant 0.000000e+00 : f32
      %12 = vector.broadcast %cst_10 : f32 to vector<32x128xf32>
      %c0_11 = arith.constant 0 : index
      %c0_12 = arith.constant 0 : index
      %13 = vector.load %arg7[%c0_11, %c0_12] : memref<32x128xf32, #tpu.memory_space<vmem>>, vector<32x128xf32>
      tpu.vector_store %arg7[%c0_11, %c0_12], %12 {strides = array<i32>} : memref<32x128xf32, #tpu.memory_space<vmem>>, vector<32x128xf32>,
    } else {
    }
    %c0 = arith.constant 0 : index
    %c0_1 = arith.constant 0 : index
    %3 = vector.load %arg7[%c0, %c0_1] : memref<32x128xf32, #tpu.memory_space<vmem>>, vector<32x128xf32>
    %c0_2 = arith.constant 0 : index
    %c0_3 = arith.constant 0 : index
    %4 = vector.load %arg3[%c0_2, %c0_3] : memref<32x256xbf16, #tpu.memory_space<vmem>>, vector<32x256xbf16>
    %c0_4 = arith.constant 0 : index
    %c0_5 = arith.constant 0 : index
    %5 = vector.load %arg4[%c0_4, %c0_5] : memref<256x128xbf16, #tpu.memory_space<vmem>>, vector<256x128xbf16>
    %cst = arith.constant dense<0.000000e+00> : vector<32x128xf32>
    %6 = tpu.matmul %4, %5, %cst {dimension_numbers = #tpu.dot_dimension_numbers<[1], [0], [0], [1], [0, 0, 1, 1], [], []>} : vector<32x256xbf16>, vector<256x128xbf16>, vector<32x128xf32> -> vector<32x128xf32>
    %7 = arith.addf %3, %6 : vector<32x128xf32>
    %c0_6 = arith.constant 0 : index
    %c0_7 = arith.constant 0 : index
    %8 = vector.load %arg7[%c0_6, %c0_7] : memref<32x128xf32, #tpu.memory_space<vmem>>, vector<32x128xf32>
    tpu.vector_store %arg7[%c0_6, %c0_7], %7 {strides = array<i32>} : memref<32x128xf32, #tpu.memory_space<vmem>>, vector<32x128xf32>,
    %c0_i32_8 = arith.constant 0 : i32
    %9 = arith.cmpi eq, %arg2, %c0_i32_8 : i32
    %10 = arith.extui %9 : i1 to i32
    %c0_i32_9 = arith.constant 0 : i32
    %11 = arith.cmpi ne, %10, %c0_i32_9 : i32
    scf.if %11 {
      %c0_10 = arith.constant 0 : index
      %c0_11 = arith.constant 0 : index
      %12 = vector.load %arg7[%c0_10, %c0_11] : memref<32x128xf32, #tpu.memory_space<vmem>>, vector<32x128xf32>
      %c0_12 = arith.constant 0 : index
      %c0_13 = arith.constant 0 : index
      %13 = vector.load %arg5[%c0_12, %c0_13] : memref<1x128xf32, #tpu.memory_space<vmem>>, vector<1x128xf32>
      %14 = vector.broadcast %13 : vector<1x128xf32> to vector<32x128xf32>
      %15 = arith.addf %12, %14 : vector<32x128xf32>
      %cst_14 = arith.constant 0.000000e+00 : f32
      %16 = vector.broadcast %cst_14 : f32 to vector<32x128xf32>
      %17 = arith.maximumf %15, %16 : vector<32x128xf32>
      %18 = arith.truncf %17 : vector<32x128xf32> to vector<32x128xbf16>
      %c0_15 = arith.constant 0 : index
      %c0_16 = arith.constant 0 : index
      %19 = vector.load %arg6[%c0_15, %c0_16] : memref<32x128xbf16, #tpu.memory_space<vmem>>, vector<32x128xbf16>
      tpu.vector_store %arg6[%c0_15, %c0_16], %18 {strides = array<i32>} : memref<32x128xbf16, #tpu.memory_space<vmem>>, vector<32x128xbf16>,
    } else {
    }
    return
  }
  func.func @transform_0(%arg0: i32, %arg1: i32, %arg2: i32) -> (i32, i32) {
    %c0_i32 = arith.constant 0 : i32
    return %arg0, %arg2 : i32, i32
  }
  func.func @transform_1(%arg0: i32, %arg1: i32, %arg2: i32) -> (i32, i32) {
    %c0_i32 = arith.constant 0 : i32
    return %arg2, %arg1 : i32, i32
  }
  func.func @transform_2(%arg0: i32, %arg1: i32, %arg2: i32) -> (i32, i32) {
    %c0_i32 = arith.constant 0 : i32
    %c0_i32_0 = arith.constant 0 : i32
    return %c0_i32, %arg1 : i32, i32
  }
  func.func @transform_3(%arg0: i32, %arg1: i32, %arg2: i32) -> (i32, i32) {
    %c0_i32 = arith.constant 0 : i32
    return %arg0, %arg1 : i32, i32
  }
}

module attributes {stable_mosaic.version = 11 : i64} {
  func.func @_gemm_bias_kernel(%arg0: i32, %arg1: i32, %arg2: i32, %arg3: memref<32x384xbf16, #tpu.memory_space<vmem>>, %arg4: memref<384x128xbf16, #tpu.memory_space<vmem>>, %arg5: memref<1x128xf32, #tpu.memory_space<vmem>>, %arg6: memref<32x128xbf16, #tpu.memory_space<vmem>>, %arg7: memref<32x128xf32, #tpu.memory_space<vmem>>) attributes {dimension_semantics = [#tpu.dimension_semantics<parallel>, #tpu.dimension_semantics<parallel>, #tpu.dimension_semantics<arbitrary>], iteration_bounds = array<i64: 1, 1, 1>, scalar_prefetch = 0 : i64, scratch_operands = 1 : i64, tpu.core_type = #tpu.core_type<tc>, window_params = [{transform_indices = @transform_0, window_bounds = array<i64: 32, 384>}, {transform_indices = @transform_1, window_bounds = array<i64: 384, 128>}, {transform_indices = @transform_2, window_bounds = array<i64: 1, 128>}, {transform_indices = @transform_3, window_bounds = array<i64: 32, 128>}]} {
    %c0_i32 = arith.constant 0 : i32
    %0 = arith.cmpi eq, %arg2, %c0_i32 : i32
    %1 = arith.extui %0 : i1 to i32
    %c0_i32_0 = arith.constant 0 : i32
    %2 = arith.cmpi ne, %1, %c0_i32_0 : i32
    scf.if %2 {
      %cst_10 = arith.constant 0.000000e+00 : f32
      %12 = vector.broadcast %cst_10 : f32 to vector<32x128xf32>
      %c0_11 = arith.constant 0 : index
      %c0_12 = arith.constant 0 : index
      %13 = vector.load %arg7[%c0_11, %c0_12] : memref<32x128xf32, #tpu.memory_space<vmem>>, vector<32x128xf32>
      tpu.vector_store %arg7[%c0_11, %c0_12], %12 {strides = array<i32>} : memref<32x128xf32, #tpu.memory_space<vmem>>, vector<32x128xf32>,
    } else {
    }
    %c0 = arith.constant 0 : index
    %c0_1 = arith.constant 0 : index
    %3 = vector.load %arg7[%c0, %c0_1] : memref<32x128xf32, #tpu.memory_space<vmem>>, vector<32x128xf32>
    %c0_2 = arith.constant 0 : index
    %c0_3 = arith.constant 0 : index
    %4 = vector.load %arg3[%c0_2, %c0_3] : memref<32x384xbf16, #tpu.memory_space<vmem>>, vector<32x384xbf16>
    %c0_4 = arith.constant 0 : index
    %c0_5 = arith.constant 0 : index
    %5 = vector.load %arg4[%c0_4, %c0_5] : memref<384x128xbf16, #tpu.memory_space<vmem>>, vector<384x128xbf16>
    %cst = arith.constant dense<0.000000e+00> : vector<32x128xf32>
    %6 = tpu.matmul %4, %5, %cst {dimension_numbers = #tpu.dot_dimension_numbers<[1], [0], [0], [1], [0, 0, 1, 1], [], []>} : vector<32x384xbf16>, vector<384x128xbf16>, vector<32x128xf32> -> vector<32x128xf32>
    %7 = arith.addf %3, %6 : vector<32x128xf32>
    %c0_6 = arith.constant 0 : index
    %c0_7 = arith.constant 0 : index
    %8 = vector.load %arg7[%c0_6, %c0_7] : memref<32x128xf32, #tpu.memory_space<vmem>>, vector<32x128xf32>
    tpu.vector_store %arg7[%c0_6, %c0_7], %7 {strides = array<i32>} : memref<32x128xf32, #tpu.memory_space<vmem>>, vector<32x128xf32>,
    %c0_i32_8 = arith.constant 0 : i32
    %9 = arith.cmpi eq, %arg2, %c0_i32_8 : i32
    %10 = arith.extui %9 : i1 to i32
    %c0_i32_9 = arith.constant 0 : i32
    %11 = arith.cmpi ne, %10, %c0_i32_9 : i32
    scf.if %11 {
      %c0_10 = arith.constant 0 : index
      %c0_11 = arith.constant 0 : index
      %12 = vector.load %arg7[%c0_10, %c0_11] : memref<32x128xf32, #tpu.memory_space<vmem>>, vector<32x128xf32>
      %c0_12 = arith.constant 0 : index
      %c0_13 = arith.constant 0 : index
      %13 = vector.load %arg5[%c0_12, %c0_13] : memref<1x128xf32, #tpu.memory_space<vmem>>, vector<1x128xf32>
      %14 = vector.broadcast %13 : vector<1x128xf32> to vector<32x128xf32>
      %15 = arith.addf %12, %14 : vector<32x128xf32>
      %cst_14 = arith.constant 0.000000e+00 : f32
      %16 = vector.broadcast %cst_14 : f32 to vector<32x128xf32>
      %17 = arith.maximumf %15, %16 : vector<32x128xf32>
      %18 = arith.truncf %17 : vector<32x128xf32> to vector<32x128xbf16>
      %c0_15 = arith.constant 0 : index
      %c0_16 = arith.constant 0 : index
      %19 = vector.load %arg6[%c0_15, %c0_16] : memref<32x128xbf16, #tpu.memory_space<vmem>>, vector<32x128xbf16>
      tpu.vector_store %arg6[%c0_15, %c0_16], %18 {strides = array<i32>} : memref<32x128xbf16, #tpu.memory_space<vmem>>, vector<32x128xbf16>,
    } else {
    }
    return
  }
  func.func @transform_0(%arg0: i32, %arg1: i32, %arg2: i32) -> (i32, i32) {
    %c0_i32 = arith.constant 0 : i32
    return %arg0, %arg2 : i32, i32
  }
  func.func @transform_1(%arg0: i32, %arg1: i32, %arg2: i32) -> (i32, i32) {
    %c0_i32 = arith.constant 0 : i32
    return %arg2, %arg1 : i32, i32
  }
  func.func @transform_2(%arg0: i32, %arg1: i32, %arg2: i32) -> (i32, i32) {
    %c0_i32 = arith.constant 0 : i32
    %c0_i32_0 = arith.constant 0 : i32
    return %c0_i32, %arg1 : i32, i32
  }
  func.func @transform_3(%arg0: i32, %arg1: i32, %arg2: i32) -> (i32, i32) {
    %c0_i32 = arith.constant 0 : i32
    return %arg0, %arg1 : i32, i32
  }
}

module attributes {stable_mosaic.version = 11 : i64} {
  func.func @_gemm_bias_kernel(%arg0: i32, %arg1: i32, %arg2: i32, %arg3: memref<32x128xbf16, #tpu.memory_space<vmem>>, %arg4: memref<128x128xbf16, #tpu.memory_space<vmem>>, %arg5: memref<1x128xf32, #tpu.memory_space<vmem>>, %arg6: memref<32x128xbf16, #tpu.memory_space<vmem>>, %arg7: memref<32x128xf32, #tpu.memory_space<vmem>>) attributes {dimension_semantics = [#tpu.dimension_semantics<parallel>, #tpu.dimension_semantics<parallel>, #tpu.dimension_semantics<arbitrary>], iteration_bounds = array<i64: 1, 1, 1>, scalar_prefetch = 0 : i64, scratch_operands = 1 : i64, tpu.core_type = #tpu.core_type<tc>, window_params = [{transform_indices = @transform_0, window_bounds = array<i64: 32, 128>}, {transform_indices = @transform_1, window_bounds = array<i64: 128, 128>}, {transform_indices = @transform_2, window_bounds = array<i64: 1, 128>}, {transform_indices = @transform_3, window_bounds = array<i64: 32, 128>}]} {
    %c0_i32 = arith.constant 0 : i32
    %0 = arith.cmpi eq, %arg2, %c0_i32 : i32
    %1 = arith.extui %0 : i1 to i32
    %c0_i32_0 = arith.constant 0 : i32
    %2 = arith.cmpi ne, %1, %c0_i32_0 : i32
    scf.if %2 {
      %cst_10 = arith.constant 0.000000e+00 : f32
      %12 = vector.broadcast %cst_10 : f32 to vector<32x128xf32>
      %c0_11 = arith.constant 0 : index
      %c0_12 = arith.constant 0 : index
      %13 = vector.load %arg7[%c0_11, %c0_12] : memref<32x128xf32, #tpu.memory_space<vmem>>, vector<32x128xf32>
      tpu.vector_store %arg7[%c0_11, %c0_12], %12 {strides = array<i32>} : memref<32x128xf32, #tpu.memory_space<vmem>>, vector<32x128xf32>,
    } else {
    }
    %c0 = arith.constant 0 : index
    %c0_1 = arith.constant 0 : index
    %3 = vector.load %arg7[%c0, %c0_1] : memref<32x128xf32, #tpu.memory_space<vmem>>, vector<32x128xf32>
    %c0_2 = arith.constant 0 : index
    %c0_3 = arith.constant 0 : index
    %4 = vector.load %arg3[%c0_2, %c0_3] : memref<32x128xbf16, #tpu.memory_space<vmem>>, vector<32x128xbf16>
    %c0_4 = arith.constant 0 : index
    %c0_5 = arith.constant 0 : index
    %5 = vector.load %arg4[%c0_4, %c0_5] : memref<128x128xbf16, #tpu.memory_space<vmem>>, vector<128x128xbf16>
    %cst = arith.constant dense<0.000000e+00> : vector<32x128xf32>
    %6 = tpu.matmul %4, %5, %cst {dimension_numbers = #tpu.dot_dimension_numbers<[1], [0], [0], [1], [0, 0, 1, 1], [], []>} : vector<32x128xbf16>, vector<128x128xbf16>, vector<32x128xf32> -> vector<32x128xf32>
    %7 = arith.addf %3, %6 : vector<32x128xf32>
    %c0_6 = arith.constant 0 : index
    %c0_7 = arith.constant 0 : index
    %8 = vector.load %arg7[%c0_6, %c0_7] : memref<32x128xf32, #tpu.memory_space<vmem>>, vector<32x128xf32>
    tpu.vector_store %arg7[%c0_6, %c0_7], %7 {strides = array<i32>} : memref<32x128xf32, #tpu.memory_space<vmem>>, vector<32x128xf32>,
    %c0_i32_8 = arith.constant 0 : i32
    %9 = arith.cmpi eq, %arg2, %c0_i32_8 : i32
    %10 = arith.extui %9 : i1 to i32
    %c0_i32_9 = arith.constant 0 : i32
    %11 = arith.cmpi ne, %10, %c0_i32_9 : i32
    scf.if %11 {
      %c0_10 = arith.constant 0 : index
      %c0_11 = arith.constant 0 : index
      %12 = vector.load %arg7[%c0_10, %c0_11] : memref<32x128xf32, #tpu.memory_space<vmem>>, vector<32x128xf32>
      %c0_12 = arith.constant 0 : index
      %c0_13 = arith.constant 0 : index
      %13 = vector.load %arg5[%c0_12, %c0_13] : memref<1x128xf32, #tpu.memory_space<vmem>>, vector<1x128xf32>
      %14 = vector.broadcast %13 : vector<1x128xf32> to vector<32x128xf32>
      %15 = arith.addf %12, %14 : vector<32x128xf32>
      %16 = arith.truncf %15 : vector<32x128xf32> to vector<32x128xbf16>
      %c0_14 = arith.constant 0 : index
      %c0_15 = arith.constant 0 : index
      %17 = vector.load %arg6[%c0_14, %c0_15] : memref<32x128xbf16, #tpu.memory_space<vmem>>, vector<32x128xbf16>
      tpu.vector_store %arg6[%c0_14, %c0_15], %16 {strides = array<i32>} : memref<32x128xbf16, #tpu.memory_space<vmem>>, vector<32x128xbf16>,
    } else {
    }
    return
  }
  func.func @transform_0(%arg0: i32, %arg1: i32, %arg2: i32) -> (i32, i32) {
    %c0_i32 = arith.constant 0 : i32
    return %arg0, %arg2 : i32, i32
  }
  func.func @transform_1(%arg0: i32, %arg1: i32, %arg2: i32) -> (i32, i32) {
    %c0_i32 = arith.constant 0 : i32
    return %arg2, %arg1 : i32, i32
  }
  func.func @transform_2(%arg0: i32, %arg1: i32, %arg2: i32) -> (i32, i32) {
    %c0_i32 = arith.constant 0 : i32
    %c0_i32_0 = arith.constant 0 : i32
    return %c0_i32, %arg1 : i32, i32
  }
  func.func @transform_3(%arg0: i32, %arg1: i32, %arg2: i32) -> (i32, i32) {
    %c0_i32 = arith.constant 0 : i32
    return %arg0, %arg1 : i32, i32
  }
}

module attributes {stable_mosaic.version = 11 : i64} {
  func.func @_gemm_kernel(%arg0: i32, %arg1: i32, %arg2: i32, %arg3: memref<48x128xbf16, #tpu.memory_space<vmem>>, %arg4: memref<128x128xbf16, #tpu.memory_space<vmem>>, %arg5: memref<48x128xf32, #tpu.memory_space<vmem>>, %arg6: memref<48x128xf32, #tpu.memory_space<vmem>>) attributes {dimension_semantics = [#tpu.dimension_semantics<parallel>, #tpu.dimension_semantics<parallel>, #tpu.dimension_semantics<arbitrary>], iteration_bounds = array<i64: 1, 1, 1>, scalar_prefetch = 0 : i64, scratch_operands = 1 : i64, tpu.core_type = #tpu.core_type<tc>, window_params = [{transform_indices = @transform_0, window_bounds = array<i64: 48, 128>}, {transform_indices = @transform_1, window_bounds = array<i64: 128, 128>}, {transform_indices = @transform_2, window_bounds = array<i64: 48, 128>}]} {
    %c0_i32 = arith.constant 0 : i32
    %0 = arith.cmpi eq, %arg2, %c0_i32 : i32
    %1 = arith.extui %0 : i1 to i32
    %c0_i32_0 = arith.constant 0 : i32
    %2 = arith.cmpi ne, %1, %c0_i32_0 : i32
    scf.if %2 {
      %cst_10 = arith.constant 0.000000e+00 : f32
      %12 = vector.broadcast %cst_10 : f32 to vector<48x128xf32>
      %c0_11 = arith.constant 0 : index
      %c0_12 = arith.constant 0 : index
      %13 = vector.load %arg6[%c0_11, %c0_12] : memref<48x128xf32, #tpu.memory_space<vmem>>, vector<48x128xf32>
      tpu.vector_store %arg6[%c0_11, %c0_12], %12 {strides = array<i32>} : memref<48x128xf32, #tpu.memory_space<vmem>>, vector<48x128xf32>,
    } else {
    }
    %c0 = arith.constant 0 : index
    %c0_1 = arith.constant 0 : index
    %3 = vector.load %arg6[%c0, %c0_1] : memref<48x128xf32, #tpu.memory_space<vmem>>, vector<48x128xf32>
    %c0_2 = arith.constant 0 : index
    %c0_3 = arith.constant 0 : index
    %4 = vector.load %arg3[%c0_2, %c0_3] : memref<48x128xbf16, #tpu.memory_space<vmem>>, vector<48x128xbf16>
    %c0_4 = arith.constant 0 : index
    %c0_5 = arith.constant 0 : index
    %5 = vector.load %arg4[%c0_4, %c0_5] : memref<128x128xbf16, #tpu.memory_space<vmem>>, vector<128x128xbf16>
    %cst = arith.constant dense<0.000000e+00> : vector<48x128xf32>
    %6 = tpu.matmul %4, %5, %cst {dimension_numbers = #tpu.dot_dimension_numbers<[1], [0], [0], [1], [0, 0, 1, 1], [], []>} : vector<48x128xbf16>, vector<128x128xbf16>, vector<48x128xf32> -> vector<48x128xf32>
    %7 = arith.addf %3, %6 : vector<48x128xf32>
    %c0_6 = arith.constant 0 : index
    %c0_7 = arith.constant 0 : index
    %8 = vector.load %arg6[%c0_6, %c0_7] : memref<48x128xf32, #tpu.memory_space<vmem>>, vector<48x128xf32>
    tpu.vector_store %arg6[%c0_6, %c0_7], %7 {strides = array<i32>} : memref<48x128xf32, #tpu.memory_space<vmem>>, vector<48x128xf32>,
    %c0_i32_8 = arith.constant 0 : i32
    %9 = arith.cmpi eq, %arg2, %c0_i32_8 : i32
    %10 = arith.extui %9 : i1 to i32
    %c0_i32_9 = arith.constant 0 : i32
    %11 = arith.cmpi ne, %10, %c0_i32_9 : i32
    scf.if %11 {
      %c0_10 = arith.constant 0 : index
      %c0_11 = arith.constant 0 : index
      %12 = vector.load %arg6[%c0_10, %c0_11] : memref<48x128xf32, #tpu.memory_space<vmem>>, vector<48x128xf32>
      %c0_12 = arith.constant 0 : index
      %c0_13 = arith.constant 0 : index
      %13 = vector.load %arg5[%c0_12, %c0_13] : memref<48x128xf32, #tpu.memory_space<vmem>>, vector<48x128xf32>
      tpu.vector_store %arg5[%c0_12, %c0_13], %12 {strides = array<i32>} : memref<48x128xf32, #tpu.memory_space<vmem>>, vector<48x128xf32>,
    } else {
    }
    return
  }
  func.func @transform_0(%arg0: i32, %arg1: i32, %arg2: i32) -> (i32, i32) {
    %c0_i32 = arith.constant 0 : i32
    return %arg0, %arg2 : i32, i32
  }
  func.func @transform_1(%arg0: i32, %arg1: i32, %arg2: i32) -> (i32, i32) {
    %c0_i32 = arith.constant 0 : i32
    return %arg2, %arg1 : i32, i32
  }
  func.func @transform_2(%arg0: i32, %arg1: i32, %arg2: i32) -> (i32, i32) {
    %c0_i32 = arith.constant 0 : i32
    return %arg0, %arg1 : i32, i32
  }
}

module attributes {stable_mosaic.version = 11 : i64} {
  func.func @_gemm_kernel(%arg0: i32, %arg1: i32, %arg2: i32, %arg3: memref<192x128xbf16, #tpu.memory_space<vmem>>, %arg4: memref<128x128xbf16, #tpu.memory_space<vmem>>, %arg5: memref<192x128xf32, #tpu.memory_space<vmem>>, %arg6: memref<192x128xf32, #tpu.memory_space<vmem>>) attributes {dimension_semantics = [#tpu.dimension_semantics<parallel>, #tpu.dimension_semantics<parallel>, #tpu.dimension_semantics<arbitrary>], iteration_bounds = array<i64: 1, 1, 1>, scalar_prefetch = 0 : i64, scratch_operands = 1 : i64, tpu.core_type = #tpu.core_type<tc>, window_params = [{transform_indices = @transform_0, window_bounds = array<i64: 192, 128>}, {transform_indices = @transform_1, window_bounds = array<i64: 128, 128>}, {transform_indices = @transform_2, window_bounds = array<i64: 192, 128>}]} {
    %c0_i32 = arith.constant 0 : i32
    %0 = arith.cmpi eq, %arg2, %c0_i32 : i32
    %1 = arith.extui %0 : i1 to i32
    %c0_i32_0 = arith.constant 0 : i32
    %2 = arith.cmpi ne, %1, %c0_i32_0 : i32
    scf.if %2 {
      %cst_10 = arith.constant 0.000000e+00 : f32
      %12 = vector.broadcast %cst_10 : f32 to vector<192x128xf32>
      %c0_11 = arith.constant 0 : index
      %c0_12 = arith.constant 0 : index
      %13 = vector.load %arg6[%c0_11, %c0_12] : memref<192x128xf32, #tpu.memory_space<vmem>>, vector<192x128xf32>
      tpu.vector_store %arg6[%c0_11, %c0_12], %12 {strides = array<i32>} : memref<192x128xf32, #tpu.memory_space<vmem>>, vector<192x128xf32>,
    } else {
    }
    %c0 = arith.constant 0 : index
    %c0_1 = arith.constant 0 : index
    %3 = vector.load %arg6[%c0, %c0_1] : memref<192x128xf32, #tpu.memory_space<vmem>>, vector<192x128xf32>
    %c0_2 = arith.constant 0 : index
    %c0_3 = arith.constant 0 : index
    %4 = vector.load %arg3[%c0_2, %c0_3] : memref<192x128xbf16, #tpu.memory_space<vmem>>, vector<192x128xbf16>
    %c0_4 = arith.constant 0 : index
    %c0_5 = arith.constant 0 : index
    %5 = vector.load %arg4[%c0_4, %c0_5] : memref<128x128xbf16, #tpu.memory_space<vmem>>, vector<128x128xbf16>
    %cst = arith.constant dense<0.000000e+00> : vector<192x128xf32>
    %6 = tpu.matmul %4, %5, %cst {dimension_numbers = #tpu.dot_dimension_numbers<[1], [0], [0], [1], [0, 0, 1, 1], [], []>} : vector<192x128xbf16>, vector<128x128xbf16>, vector<192x128xf32> -> vector<192x128xf32>
    %7 = arith.addf %3, %6 : vector<192x128xf32>
    %c0_6 = arith.constant 0 : index
    %c0_7 = arith.constant 0 : index
    %8 = vector.load %arg6[%c0_6, %c0_7] : memref<192x128xf32, #tpu.memory_space<vmem>>, vector<192x128xf32>
    tpu.vector_store %arg6[%c0_6, %c0_7], %7 {strides = array<i32>} : memref<192x128xf32, #tpu.memory_space<vmem>>, vector<192x128xf32>,
    %c0_i32_8 = arith.constant 0 : i32
    %9 = arith.cmpi eq, %arg2, %c0_i32_8 : i32
    %10 = arith.extui %9 : i1 to i32
    %c0_i32_9 = arith.constant 0 : i32
    %11 = arith.cmpi ne, %10, %c0_i32_9 : i32
    scf.if %11 {
      %c0_10 = arith.constant 0 : index
      %c0_11 = arith.constant 0 : index
      %12 = vector.load %arg6[%c0_10, %c0_11] : memref<192x128xf32, #tpu.memory_space<vmem>>, vector<192x128xf32>
      %c0_12 = arith.constant 0 : index
      %c0_13 = arith.constant 0 : index
      %13 = vector.load %arg5[%c0_12, %c0_13] : memref<192x128xf32, #tpu.memory_space<vmem>>, vector<192x128xf32>
      tpu.vector_store %arg5[%c0_12, %c0_13], %12 {strides = array<i32>} : memref<192x128xf32, #tpu.memory_space<vmem>>, vector<192x128xf32>,
    } else {
    }
    return
  }
  func.func @transform_0(%arg0: i32, %arg1: i32, %arg2: i32) -> (i32, i32) {
    %c0_i32 = arith.constant 0 : i32
    return %arg0, %arg2 : i32, i32
  }
  func.func @transform_1(%arg0: i32, %arg1: i32, %arg2: i32) -> (i32, i32) {
    %c0_i32 = arith.constant 0 : i32
    return %arg2, %arg1 : i32, i32
  }
  func.func @transform_2(%arg0: i32, %arg1: i32, %arg2: i32) -> (i32, i32) {
    %c0_i32 = arith.constant 0 : i32
    return %arg0, %arg1 : i32, i32
  }
}

</mosaic_0001>

<bundles_post_ra>
// kernel: multi_task_model_forward.6
= control target key start
LH: loop header
LB: loop body
LE: loop exit
PB: predicated region body
PF: predicated region fallthrough
CT: control target
= control target key end

     0   :  { %s721_s1 = inlined_call_operand.vmem [shape: bf16[128,128], index: 1, kind: input, shape index: {}]   ;;  %s722_s0 = inlined_call_operand.vmem [shape: bf16[128,128], index: 0, kind: input, shape index: {}]   ;;  %s723_s2 = inlined_call_operand.vmem [shape: f32[1,128], index: 2, kind: input, shape index: {}]   ;;  %s724_s3 = inlined_call_operand.vmem [shape: bf16[128,128], index: 3, kind: output, shape index: {}]  }
   0x1   :  { %v610_v0 = vld [vmem:[%s721_s1] sm:$0xff]   ;;  %v611_v1 = vld [vmem:[%s721_s1 + $0x8] sm:$0xff]   ;;  %v612_v2 = vld [vmem:[%s721_s1 + $0x10] sm:$0xff]  }
   0x2   :  { %562 = vmatprep.subr.bf16.mxu0 %v610_v0  ;;  %594 = vmatprep.subr.bf16.mxu1 %v610_v0  ;;  %v613_v3 = vld [vmem:[%s721_s1 + $0x18] sm:$0xff]   ;;  %v618_v4 = vld [vmem:[%s722_s0] sm:$0xff]   ;;  %v615_v7 = vld [vmem:[%s721_s1 + $0x28] sm:$0xff]  }
   0x3   :  { %563 = vmatpush3.bf16.msra.mxu0 %v610_v0  ;;  %602 = vmatpush3.bf16.msra.mxu1 %v610_v0  ;;  %v619_v5 = vld [vmem:[%s722_s0 + $0x20] sm:$0xff]   ;;  %v616_v8 = vld [vmem:[%s721_s1 + $0x30] sm:$0xff]   ;;  %v617_v9 = vld [vmem:[%s721_s1 + $0x38] sm:$0xff]  }
   0x4   :  { %564 = vmatprep.subr.bf16.mxu0 %v611_v1  ;;  %595 = vmatprep.subr.bf16.mxu1 %v611_v1  ;;  %v614_v6 = vld [vmem:[%s721_s1 + $0x20] sm:$0xff]   ;;  %v620_v10 = vld [vmem:[%s722_s0 + $0x8] sm:$0xff]   ;;  %v622_v12 = vld [vmem:[%s722_s0 + $0x10] sm:$0xff]  }
   0x5   :  { %578 = vmatprep.mubr.bf16.mxu0 %v618_v4  ;;  %586 = vmatprep.mubr.bf16.mxu1 %v619_v5  ;;  %v621_v11 = vld [vmem:[%s722_s0 + $0x28] sm:$0xff]   ;;  %v623_v13 = vld [vmem:[%s722_s0 + $0x30] sm:$0xff]   ;;  %v624_v14 = vld [vmem:[%s722_s0 + $0x18] sm:$0xff]  }
   0x6   :  { %v625_v15 = vld [vmem:[%s722_s0 + $0x38] sm:$0xff]   ;;  %v466_v16 = vld [vmem:[%s723_s2] ss:$0 sm:$0xff] }
   0x7   :  { %565 = vmatpush3.bf16.msra.mxu0 %v611_v1  ;;  %603 = vmatpush3.bf16.msra.mxu1 %v611_v1 }
   0x8   :  { %566 = vmatprep.subr.bf16.mxu0 %v612_v2  ;;  %596 = vmatprep.subr.bf16.mxu1 %v612_v2 }
   0xb   :  { %567 = vmatpush3.bf16.msra.mxu0 %v612_v2  ;;  %604 = vmatpush3.bf16.msra.mxu1 %v612_v2 }
   0xc   :  { %568 = vmatprep.subr.bf16.mxu0 %v613_v3  ;;  %597 = vmatprep.subr.bf16.mxu1 %v613_v3 }
   0xf   :  { %569 = vmatpush3.bf16.msra.mxu0 %v613_v3  ;;  %605 = vmatpush3.bf16.msra.mxu1 %v613_v3 }
  0x10   :  { %570 = vmatprep.subr.bf16.mxu0 %v614_v6  ;;  %598 = vmatprep.subr.bf16.mxu1 %v614_v6 }
  0x13   :  { %571 = vmatpush3.bf16.msra.mxu0 %v614_v6  ;;  %606 = vmatpush3.bf16.msra.mxu1 %v614_v6 }
  0x14   :  { %572 = vmatprep.subr.bf16.mxu0 %v615_v7  ;;  %599 = vmatprep.subr.bf16.mxu1 %v615_v7 }
  0x17   :  { %573 = vmatpush3.bf16.msra.mxu0 %v615_v7  ;;  %607 = vmatpush3.bf16.msra.mxu1 %v615_v7 }
  0x18   :  { %574 = vmatprep.subr.bf16.mxu0 %v616_v8  ;;  %600 = vmatprep.subr.bf16.mxu1 %v616_v8 }
  0x1b   :  { %575 = vmatpush3.bf16.msra.mxu0 %v616_v8  ;;  %608 = vmatpush3.bf16.msra.mxu1 %v616_v8 }
  0x1c   :  { %576 = vmatprep.subr.bf16.mxu0 %v617_v9  ;;  %601 = vmatprep.subr.bf16.mxu1 %v617_v9 }
  0x1f   :  { %577 = vmatpush3.bf16.msra.mxu0 %v617_v9  ;;  %609 = vmatpush3.bf16.msra.mxu1 %v617_v9 }
  0x22   :  { %579 = vmatmul.mubr.bf16.vlgmr.msra.gmra.mrb[0].mxu0 %v620_v10  ;;  %587 = vmatmul.mubr.bf16.vlgmr.msra.gmra.mrb[0].mxu1 %v621_v11 }
  0x23   :  { %582 = vmatprep.mubr.bf16.mxu0 %v622_v12  ;;  %590 = vmatprep.mubr.bf16.mxu1 %v623_v13 }
  0x2a   :  { %583 = vmatmul.mubr.bf16.gmra.mrb[4].mxu0 %v624_v14  ;;  %591 = vmatmul.mubr.bf16.gmra.mrb[4].mxu1 %v625_v15 }
  0xf5   :  { %v580_v17 = vpop.f32.mrb[0].mxu0  ;;  %v588_v18 = vpop.f32.mrb[0].mxu1 }
  0xf6   :  { %v336_v19 = vadd.f32 %v580_v17, %v466_v16  ;;  %v344_v20 = vadd.f32 %v588_v18, %v466_v16  ;;  %v213_v21 = vpop.f32.mrb[1].mxu0  ;;  %v245_v22 = vpop.f32.mrb[1].mxu1 }
  0xf7   :  { %v334_v23 = vadd.f32 %v466_v16, %v213_v21  ;;  %v342_v24 = vadd.f32 %v466_v16, %v245_v22  ;;  %v581_v25 = vpop.f32.mrb[2].mxu0  ;;  %v589_v26 = vpop.f32.mrb[2].mxu1 }
  0xf8   :  { %v337_v27 = vadd.f32 %v581_v25, %v466_v16  ;;  %v345_v28 = vadd.f32 %v589_v26, %v466_v16  ;;  %v216_v29 = vpop.f32.mrb[3].mxu0  ;;  %v248_v30 = vpop.f32.mrb[3].mxu1  ;;  %v352_v33 = vmax.f32 %v336_v19, 0.0  ;;  %v360_v34 = vmax.f32 %v344_v20, 0.0 }
  0xf9   :  { %v335_v31 = vadd.f32 %v466_v16, %v216_v29  ;;  %v343_v32 = vadd.f32 %v466_v16, %v248_v30  ;;  %v350_v37 = vmax.f32 %v334_v23, 0.0  ;;  %v358_v38 = vmax.f32 %v342_v24, 0.0 }
  0xfa   :  { %v353_v35 = vmax.f32 %v337_v27, 0.0  ;;  %v361_v36 = vmax.f32 %v345_v28, 0.0 }
  0xfb   :  { %v351_v39 = vmax.f32 %v335_v31, 0.0  ;;  %v359_v40 = vmax.f32 %v343_v32, 0.0 }
  0xfc   :  { %v507_v41 = vpack.c.bf16 %v353_v35, %v352_v33  ;;  %v527_v42 = vpack.c.bf16 %v361_v36, %v360_v34 }
  0xfd   :  { %v502_v43 = vpack.c.bf16 %v351_v39, %v350_v37  ;;  %v522_v44 = vpack.c.bf16 %v359_v40, %v358_v38  ;;  %v584_v45 = vpop.f32.mrb[4].mxu0  ;;  %v592_v46 = vpop.f32.mrb[4].mxu1 }
  0xfe   :  { %539 = vst [vmem:[%s724_s3 + $0x8] sm:$0xff] %v507_v41   ;;  %543 = vst [vmem:[%s724_s3 + $0x28] sm:$0xff] %v527_v42   ;;  %v340_v47 = vadd.f32 %v584_v45, %v466_v16  ;;  %v348_v48 = vadd.f32 %v592_v46, %v466_v16  ;;  %v229_v49 = vpop.f32.mrb[5].mxu0  ;;  %v261_v50 = vpop.f32.mrb[5].mxu1 }
  0xff   :  { %503 = vst [vmem:[%s724_s3] sm:$0xff] %v502_v43   ;;  %542 = vst [vmem:[%s724_s3 + $0x20] sm:$0xff] %v522_v44   ;;  %v338_v51 = vadd.f32 %v466_v16, %v229_v49  ;;  %v346_v52 = vadd.f32 %v466_v16, %v261_v50  ;;  %v585_v53 = vpop.f32.mrb[6].mxu0  ;;  %v593_v54 = vpop.f32.mrb[6].mxu1 }
 0x100   :  { %v341_v55 = vadd.f32 %v585_v53, %v466_v16  ;;  %v349_v56 = vadd.f32 %v593_v54, %v466_v16  ;;  %v232_v57 = vpop.f32.mrb[7].mxu0  ;;  %v264_v58 = vpop.f32.mrb[7].mxu1  ;;  %v356_v61 = vmax.f32 %v340_v47, 0.0  ;;  %v364_v62 = vmax.f32 %v348_v48, 0.0 }
 0x101   :  { %v339_v59 = vadd.f32 %v466_v16, %v232_v57  ;;  %v347_v60 = vadd.f32 %v466_v16, %v264_v58  ;;  %v354_v1 = vmax.f32 %v338_v51, 0.0  ;;  %v362_v2 = vmax.f32 %v346_v52, 0.0 }
 0x102   :  { %v357_v63 = vmax.f32 %v341_v55, 0.0  ;;  %v365_v0 = vmax.f32 %v349_v56, 0.0 }
 0x103   :  { %v355_v3 = vmax.f32 %v339_v59, 0.0  ;;  %v363_v4 = vmax.f32 %v347_v60, 0.0 }
 0x104   :  { %v517_v5 = vpack.c.bf16 %v357_v63, %v356_v61  ;;  %v537_v6 = vpack.c.bf16 %v365_v0, %v364_v62 }
 0x105   :  { %v512_v7 = vpack.c.bf16 %v355_v3, %v354_v1  ;;  %v532_v8 = vpack.c.bf16 %v363_v4, %v362_v2 }
 0x106   :  { %541 = vst [vmem:[%s724_s3 + $0x18] sm:$0xff] %v517_v5   ;;  %545 = vst [vmem:[%s724_s3 + $0x38] sm:$0xff] %v537_v6  }
 0x107   :  { %540 = vst [vmem:[%s724_s3 + $0x10] sm:$0xff] %v512_v7   ;;  %544 = vst [vmem:[%s724_s3 + $0x30] sm:$0xff] %v532_v8  }

// kernel: multi_task_model_forward.7
= control target key start
LH: loop header
LB: loop body
LE: loop exit
PB: predicated region body
PF: predicated region fallthrough
CT: control target
= control target key end

     0   :  { %s477_s1 = inlined_call_operand.vmem [shape: bf16[256,128], index: 1, kind: input, shape index: {}]   ;;  %s478_s0 = inlined_call_operand.vmem [shape: bf16[32,256], index: 0, kind: input, shape index: {}]   ;;  %s479_s2 = inlined_call_operand.vmem [shape: f32[1,128], index: 2, kind: input, shape index: {}]   ;;  %s480_s3 = inlined_call_operand.vmem [shape: bf16[32,128], index: 3, kind: output, shape index: {}]  }
   0x1   :  { %v366_v0 = vld [vmem:[%s477_s1 + $0x40] sm:$0xff]   ;;  %v368_v2 = vld [vmem:[%s477_s1 + $0x48] sm:$0xff]   ;;  %v370_v4 = vld [vmem:[%s477_s1 + $0x50] sm:$0xff]  }
   0x2   :  { %v367_v1 = vld [vmem:[%s477_s1] sm:$0xff]   ;;  %322 = vmatprep.subr.bf16.mxu0 %v366_v0  ;;  %350 = vmatprep.subr.bf16.mxu1 %v366_v0  ;;  %v369_v3 = vld [vmem:[%s477_s1 + $0x8] sm:$0xff]   ;;  %v371_v5 = vld [vmem:[%s477_s1 + $0x10] sm:$0xff]  }
   0x3   :  { %323 = vmatpush3.bf16.msra.mxu0 %v367_v1  ;;  %358 = vmatpush3.bf16.msra.mxu1 %v367_v1  ;;  %v372_v6 = vld [vmem:[%s477_s1 + $0x58] sm:$0xff]   ;;  %v374_v8 = vld [vmem:[%s477_s1 + $0x60] sm:$0xff]   ;;  %v376_v10 = vld [vmem:[%s477_s1 + $0x68] sm:$0xff]  }
   0x4   :  { %324 = vmatprep.subr.bf16.mxu0 %v368_v2  ;;  %351 = vmatprep.subr.bf16.mxu1 %v368_v2  ;;  %v373_v7 = vld [vmem:[%s477_s1 + $0x18] sm:$0xff]   ;;  %v375_v9 = vld [vmem:[%s477_s1 + $0x20] sm:$0xff]   ;;  %v377_v13 = vld [vmem:[%s477_s1 + $0x28] sm:$0xff]  }
   0x5   :  { %v384_v11 = vld [vmem:[%s478_s0 + $0x4] ss:$8 sps:$4 sm:$0xff]   ;;  %v387_v12 = vld [vmem:[%s478_s0 + $0x14] ss:$8 sps:$4 sm:$0xff]   ;;  %v382_v18 = vld [vmem:[%s478_s0] ss:$8 sps:$4 sm:$0xff]  }
   0x6   :  { %v378_v14 = vld [vmem:[%s477_s1 + $0x70] sm:$0xff]   ;;  %211 = vmatprep.mubr.bf16.mxu0 %v384_v11  ;;  %219 = vmatprep.mubr.bf16.mxu1 %v387_v12  ;;  %v380_v16 = vld [vmem:[%s477_s1 + $0x78] sm:$0xff]   ;;  %v302_v23 = vld [vmem:[%s479_s2] ss:$0 sm:$0xff] }
   0x7   :  { %325 = vmatpush3.bf16.msra.mxu0 %v369_v3  ;;  %359 = vmatpush3.bf16.msra.mxu1 %v369_v3  ;;  %v379_v15 = vld [vmem:[%s477_s1 + $0x30] sm:$0xff]   ;;  %v381_v17 = vld [vmem:[%s477_s1 + $0x38] sm:$0xff]  }
   0x8   :  { %326 = vmatprep.subr.bf16.mxu0 %v370_v4  ;;  %352 = vmatprep.subr.bf16.mxu1 %v370_v4  ;;  %v385_v19 = vld [vmem:[%s478_s0 + $0x10] ss:$8 sps:$4 sm:$0xff]  }
   0xb   :  { %327 = vmatpush3.bf16.msra.mxu0 %v371_v5  ;;  %360 = vmatpush3.bf16.msra.mxu1 %v371_v5 }
   0xc   :  { %328 = vmatprep.subr.bf16.mxu0 %v372_v6  ;;  %353 = vmatprep.subr.bf16.mxu1 %v372_v6 }
   0xf   :  { %329 = vmatpush3.bf16.msra.mxu0 %v373_v7  ;;  %361 = vmatpush3.bf16.msra.mxu1 %v373_v7 }
  0x10   :  { %330 = vmatprep.subr.bf16.mxu0 %v374_v8  ;;  %354 = vmatprep.subr.bf16.mxu1 %v374_v8 }
  0x13   :  { %331 = vmatpush3.bf16.msra.mxu0 %v375_v9  ;;  %362 = vmatpush3.bf16.msra.mxu1 %v375_v9 }
  0x14   :  { %332 = vmatprep.subr.bf16.mxu0 %v376_v10  ;;  %355 = vmatprep.subr.bf16.mxu1 %v376_v10 }
  0x17   :  { %333 = vmatpush3.bf16.msra.mxu0 %v377_v13  ;;  %363 = vmatpush3.bf16.msra.mxu1 %v377_v13 }
  0x18   :  { %334 = vmatprep.subr.bf16.mxu0 %v378_v14  ;;  %356 = vmatprep.subr.bf16.mxu1 %v378_v14 }
  0x1b   :  { %335 = vmatpush3.bf16.msra.mxu0 %v379_v15  ;;  %364 = vmatpush3.bf16.msra.mxu1 %v379_v15 }
  0x1c   :  { %336 = vmatprep.subr.bf16.mxu0 %v380_v16  ;;  %357 = vmatprep.subr.bf16.mxu1 %v380_v16 }
  0x1f   :  { %337 = vmatpush3.bf16.msra.mxu0 %v381_v17  ;;  %365 = vmatpush3.bf16.msra.mxu1 %v381_v17 }
  0x22   :  { %212 = vmatmul.mubr.bf16.vlgmr.msra.gmra.mrb[0].mxu0 %v382_v18  ;;  %220 = vmatmul.mubr.bf16.vlgmr.msra.gmra.mrb[0].mxu1 %v385_v19 }
  0xf5   :  { %v338_v20 = vpop.f32.mrb[0].mxu0  ;;  %v344_v21 = vpop.f32.mrb[0].mxu1 }
  0xf6   :  { %v339_v22 = vpop.f32.mrb[1].mxu0  ;;  %v345_v24 = vpop.f32.mrb[1].mxu1 }
  0xf7   :  { %v340_v25 = vadd.f32 %v339_v22, %v338_v20  ;;  %v346_v26 = vadd.f32 %v345_v24, %v344_v21  ;;  %v341_v27 = vpop.f32.mrb[2].mxu0  ;;  %v347_v28 = vpop.f32.mrb[2].mxu1 }
  0xf8   :  { %v342_v29 = vpop.f32.mrb[3].mxu0  ;;  %v348_v30 = vpop.f32.mrb[3].mxu1 }
  0xf9   :  { %v250_v31 = vadd.f32 %v340_v25, %v302_v23  ;;  %v252_v32 = vadd.f32 %v346_v26, %v302_v23  ;;  %v343_v33 = vadd.f32 %v342_v29, %v341_v27  ;;  %v349_v34 = vadd.f32 %v348_v30, %v347_v28 }
  0xfb   :  { %v251_v35 = vadd.f32 %v343_v33, %v302_v23  ;;  %v253_v36 = vadd.f32 %v349_v34, %v302_v23  ;;  %v254_v37 = vmax.f32 %v250_v31, 0.0  ;;  %v256_v38 = vmax.f32 %v252_v32, 0.0 }
  0xfd   :  { %v255_v39 = vmax.f32 %v251_v35, 0.0  ;;  %v257_v40 = vmax.f32 %v253_v36, 0.0 }
  0xff   :  { %v314_v41 = vpack.c.bf16 %v255_v39, %v254_v37  ;;  %v319_v42 = vpack.c.bf16 %v257_v40, %v256_v38 }
 0x101   :  { %315 = vst [vmem:[%s480_s3] sm:$0xff] %v314_v41   ;;  %321 = vst [vmem:[%s480_s3 + $0x8] sm:$0xff] %v319_v42  }

// kernel: multi_task_model_forward.8
= control target key start
LH: loop header
LB: loop body
LE: loop exit
PB: predicated region body
PF: predicated region fallthrough
CT: control target
= control target key end

     0   :  { %s670_s1 = inlined_call_operand.vmem [shape: bf16[384,128], index: 1, kind: input, shape index: {}]   ;;  %s671_s0 = inlined_call_operand.vmem [shape: bf16[32,384], index: 0, kind: input, shape index: {}]   ;;  %s672_s2 = inlined_call_operand.vmem [shape: f32[1,128], index: 2, kind: input, shape index: {}]   ;;  %s673_s3 = inlined_call_operand.vmem [shape: bf16[32,128], index: 3, kind: output, shape index: {}]  }
   0x1   :  { %v519_v0 = vld [vmem:[%s670_s1 + $0x40] sm:$0xff]   ;;  %v522_v3 = vld [vmem:[%s670_s1 + $0x48] sm:$0xff]   ;;  %v525_v6 = vld [vmem:[%s670_s1 + $0x50] sm:$0xff]  }
   0x2   :  { %v520_v1 = vld [vmem:[%s670_s1] sm:$0xff]   ;;  %461 = vmatprep.subr.bf16.mxu0 %v519_v0  ;;  %v523_v4 = vld [vmem:[%s670_s1 + $0x8] sm:$0xff]   ;;  %v526_v7 = vld [vmem:[%s670_s1 + $0x10] sm:$0xff]  }
   0x3   :  { %v521_v2 = vld [vmem:[%s670_s1 + $0x80] sm:$0xff]   ;;  %462 = vmatpush3.bf16.msra.mxu0 %v520_v1  ;;  %v524_v5 = vld [vmem:[%s670_s1 + $0x88] sm:$0xff]   ;;  %v527_v8 = vld [vmem:[%s670_s1 + $0x90] sm:$0xff]  }
   0x4   :  { %499 = vmatprep.subr.bf16.mxu1 %v521_v2  ;;  %463 = vmatprep.subr.bf16.mxu0 %v522_v3  ;;  %v528_v9 = vld [vmem:[%s670_s1 + $0x58] sm:$0xff]   ;;  %v531_v12 = vld [vmem:[%s670_s1 + $0x60] sm:$0xff]   ;;  %v534_v15 = vld [vmem:[%s670_s1 + $0x68] sm:$0xff]  }
   0x5   :  { %500 = vmatpush3.bf16.msra.mxu1 %v521_v2  ;;  %v529_v10 = vld [vmem:[%s670_s1 + $0x18] sm:$0xff]   ;;  %v533_v13 = vld [vmem:[%s670_s1 + $0xa0] sm:$0xff]   ;;  %v536_v16 = vld [vmem:[%s670_s1 + $0xa8] sm:$0xff]  }
   0x6   :  { %501 = vmatprep.subr.bf16.mxu1 %v524_v5  ;;  %v530_v11 = vld [vmem:[%s670_s1 + $0x98] sm:$0xff]   ;;  %v532_v14 = vld [vmem:[%s670_s1 + $0x20] sm:$0xff]   ;;  %v535_v17 = vld [vmem:[%s670_s1 + $0x28] sm:$0xff]  }
   0x7   :  { %464 = vmatpush3.bf16.msra.mxu0 %v523_v4  ;;  %v537_v18 = vld [vmem:[%s670_s1 + $0x70] sm:$0xff]   ;;  %v540_v21 = vld [vmem:[%s670_s1 + $0x78] sm:$0xff]   ;;  %v543_v26 = vld [vmem:[%s671_s0] ss:$12 sps:$4 sm:$0xff]  }
   0x8   :  { %465 = vmatprep.subr.bf16.mxu0 %v525_v6  ;;  %v538_v19 = vld [vmem:[%s670_s1 + $0x30] sm:$0xff]   ;;  %v542_v22 = vld [vmem:[%s670_s1 + $0xb8] sm:$0xff]   ;;  %v547_v28 = vld [vmem:[%s671_s0 + $0x20] ss:$12 sps:$4 sm:$0xff]  }
   0x9   :  { %502 = vmatpush3.bf16.msra.mxu1 %v524_v5  ;;  %v539_v20 = vld [vmem:[%s670_s1 + $0xb0] sm:$0xff]   ;;  %v541_v25 = vld [vmem:[%s670_s1 + $0x38] sm:$0xff]   ;;  %v441_v37 = vld [vmem:[%s672_s2] ss:$0 sm:$0xff] }
   0xa   :  { %503 = vmatprep.subr.bf16.mxu1 %v527_v8  ;;  %v545_v23 = vld [vmem:[%s671_s0 + $0x4] ss:$12 sps:$4 sm:$0xff]   ;;  %v546_v24 = vld [vmem:[%s671_s0 + $0x8] ss:$12 sps:$4 sm:$0xff]  }
   0xb   :  { %466 = vmatpush3.bf16.msra.mxu0 %v526_v7  ;;  %291 = vmatprep.mubr.bf16.mxu0 %v545_v23  ;;  %v548_v27 = vld [vmem:[%s671_s0 + $0x1c] ss:$12 sps:$4 sm:$0xff]   ;;  %v550_v29 = vld [vmem:[%s671_s0 + $0x18] ss:$12 sps:$4 sm:$0xff]  }
   0xc   :  { %467 = vmatprep.subr.bf16.mxu0 %v528_v9  ;;  %515 = vmatprep.mubr.bf16.mxu1 %v546_v24 }
   0xd   :  { %504 = vmatpush3.bf16.msra.mxu1 %v527_v8 }
   0xe   :  { %505 = vmatprep.subr.bf16.mxu1 %v530_v11 }
   0xf   :  { %468 = vmatpush3.bf16.msra.mxu0 %v529_v10 }
  0x10   :  { %469 = vmatprep.subr.bf16.mxu0 %v531_v12 }
  0x11   :  { %506 = vmatpush3.bf16.msra.mxu1 %v530_v11 }
  0x12   :  { %507 = vmatprep.subr.bf16.mxu1 %v533_v13 }
  0x13   :  { %470 = vmatpush3.bf16.msra.mxu0 %v532_v14 }
  0x14   :  { %471 = vmatprep.subr.bf16.mxu0 %v534_v15 }
  0x15   :  { %508 = vmatpush3.bf16.msra.mxu1 %v533_v13 }
  0x16   :  { %509 = vmatprep.subr.bf16.mxu1 %v536_v16 }
  0x17   :  { %472 = vmatpush3.bf16.msra.mxu0 %v535_v17 }
  0x18   :  { %473 = vmatprep.subr.bf16.mxu0 %v537_v18 }
  0x19   :  { %510 = vmatpush3.bf16.msra.mxu1 %v536_v16 }
  0x1a   :  { %511 = vmatprep.subr.bf16.mxu1 %v539_v20 }
  0x1b   :  { %474 = vmatpush3.bf16.msra.mxu0 %v538_v19 }
  0x1c   :  { %475 = vmatprep.subr.bf16.mxu0 %v540_v21 }
  0x1d   :  { %512 = vmatpush3.bf16.msra.mxu1 %v539_v20 }
  0x1e   :  { %513 = vmatprep.subr.bf16.mxu1 %v542_v22 }
  0x1f   :  { %476 = vmatpush3.bf16.msra.mxu0 %v541_v25 }
  0x21   :  { %514 = vmatpush3.bf16.msra.mxu1 %v542_v22 }
  0x22   :  { %292 = vmatmul.mubr.bf16.vlgmr.msra.gmra.mrb[0].mxu0 %v543_v26 }
  0x23   :  { %299 = vmatprep.mubr.bf16.mxu0 %v548_v27 }
  0x24   :  { %516 = vmatmul.mubr.bf16.vlgmr.msra.gmra.mrb[0].mxu1 %v547_v28 }
  0x2a   :  { %300 = vmatmul.mubr.bf16.gmra.mrb[4].mxu0 %v550_v29 }
  0xf5   :  { %v477_v30 = vpop.f32.mrb[0].mxu0 }
  0xf6   :  { %v478_v31 = vpop.f32.mrb[1].mxu0 }
  0xf7   :  { %v479_v32 = vadd.f32 %v478_v31, %v477_v30  ;;  %v480_v33 = vpop.f32.mrb[2].mxu0  ;;  %v517_v34 = vpop.f32.mrb[0].mxu1 }
  0xf8   :  { %v481_v35 = vpop.f32.mrb[3].mxu0  ;;  %v342_v36 = vpop.f32.mrb[1].mxu1 }
  0xf9   :  { %v482_v38 = vadd.f32 %v481_v35, %v480_v33  ;;  %v343_v39 = vadd.f32 %v479_v32, %v342_v36  ;;  %v518_v40 = vpop.f32.mrb[2].mxu1 }
  0xfa   :  { %v345_v41 = vpop.f32.mrb[3].mxu1 }
  0xfb   :  { %v379_v42 = vadd.f32 %v441_v37, %v343_v39  ;;  %v346_v43 = vadd.f32 %v482_v38, %v345_v41 }
  0xfd   :  { %v380_v44 = vadd.f32 %v441_v37, %v346_v43  ;;  %v483_v45 = vpop.f32.mrb[4].mxu0  ;;  %v383_v47 = vmax.f32 %v379_v42, 0.0 }
  0xfe   :  { %v484_v46 = vpop.f32.mrb[5].mxu0 }
  0xff   :  { %v384_v48 = vmax.f32 %v380_v44, 0.0  ;;  %v485_v49 = vadd.f32 %v484_v46, %v483_v45  ;;  %v486_v50 = vpop.f32.mrb[6].mxu0 }
 0x100   :  { %v487_v51 = vpop.f32.mrb[7].mxu0 }
 0x101   :  { %v453_v52 = vpack.c.bf16 %v384_v48, %v383_v47  ;;  %v351_v53 = vadd.f32 %v517_v34, %v485_v49  ;;  %v488_v54 = vadd.f32 %v487_v51, %v486_v50 }
 0x103   :  { %454 = vst [vmem:[%s673_s3] sm:$0xff] %v453_v52   ;;  %v381_v55 = vadd.f32 %v441_v37, %v351_v53  ;;  %v354_v56 = vadd.f32 %v518_v40, %v488_v54 }
 0x105   :  { %v382_v57 = vadd.f32 %v441_v37, %v354_v56  ;;  %v385_v58 = vmax.f32 %v381_v55, 0.0 }
 0x107   :  { %v386_v59 = vmax.f32 %v382_v57, 0.0 }
 0x109   :  { %v458_v60 = vpack.c.bf16 %v386_v59, %v385_v58 }
 0x10b   :  { %460 = vst [vmem:[%s673_s3 + $0x8] sm:$0xff] %v458_v60  }

// kernel: multi_task_model_forward.9
= control target key start
LH: loop header
LB: loop body
LE: loop exit
PB: predicated region body
PF: predicated region fallthrough
CT: control target
= control target key end

     0   :  { %s335_s1 = inlined_call_operand.vmem [shape: bf16[128,128], index: 1, kind: input, shape index: {}]   ;;  %s336_s0 = inlined_call_operand.vmem [shape: bf16[32,128], index: 0, kind: input, shape index: {}]   ;;  %s337_s2 = inlined_call_operand.vmem [shape: f32[1,128], index: 2, kind: input, shape index: {}]   ;;  %s338_s3 = inlined_call_operand.vmem [shape: bf16[32,128], index: 3, kind: output, shape index: {}]  }
   0x1   :  { %v266_v0 = vld [vmem:[%s335_s1] sm:$0xff]   ;;  %v267_v1 = vld [vmem:[%s335_s1 + $0x8] sm:$0xff]   ;;  %v268_v2 = vld [vmem:[%s335_s1 + $0x10] sm:$0xff]  }
   0x2   :  { %246 = vmatprep.subr.bf16.mxu0 %v266_v0  ;;  %v269_v3 = vld [vmem:[%s335_s1 + $0x18] sm:$0xff]   ;;  %v274_v4 = vld [vmem:[%s336_s0] sm:$0xff]   ;;  %v271_v6 = vld [vmem:[%s335_s1 + $0x28] sm:$0xff]  }
   0x3   :  { %247 = vmatpush3.bf16.msra.mxu0 %v266_v0  ;;  %262 = vmatprep.mubr.bf16.mxu0 %v274_v4  ;;  %v270_v5 = vld [vmem:[%s335_s1 + $0x20] sm:$0xff]   ;;  %v272_v7 = vld [vmem:[%s335_s1 + $0x30] sm:$0xff]   ;;  %v273_v8 = vld [vmem:[%s335_s1 + $0x38] sm:$0xff]  }
   0x4   :  { %248 = vmatprep.subr.bf16.mxu0 %v267_v1  ;;  %v275_v9 = vld [vmem:[%s336_s0 + $0x8] sm:$0xff]   ;;  %v216_v11 = vld [vmem:[%s337_s2] ss:$0 sm:$0xff] }
   0x7   :  { %249 = vmatpush3.bf16.msra.mxu0 %v267_v1 }
   0x8   :  { %250 = vmatprep.subr.bf16.mxu0 %v268_v2 }
   0xb   :  { %251 = vmatpush3.bf16.msra.mxu0 %v268_v2 }
   0xc   :  { %252 = vmatprep.subr.bf16.mxu0 %v269_v3 }
   0xf   :  { %253 = vmatpush3.bf16.msra.mxu0 %v269_v3 }
  0x10   :  { %254 = vmatprep.subr.bf16.mxu0 %v270_v5 }
  0x13   :  { %255 = vmatpush3.bf16.msra.mxu0 %v270_v5 }
  0x14   :  { %256 = vmatprep.subr.bf16.mxu0 %v271_v6 }
  0x17   :  { %257 = vmatpush3.bf16.msra.mxu0 %v271_v6 }
  0x18   :  { %258 = vmatprep.subr.bf16.mxu0 %v272_v7 }
  0x1b   :  { %259 = vmatpush3.bf16.msra.mxu0 %v272_v7 }
  0x1c   :  { %260 = vmatprep.subr.bf16.mxu0 %v273_v8 }
  0x1f   :  { %261 = vmatpush3.bf16.msra.mxu0 %v273_v8 }
  0x22   :  { %263 = vmatmul.mubr.bf16.vlgmr.msra.gmra.mrb[0].mxu0 %v275_v9 }
  0xf5   :  { %v264_v10 = vpop.f32.mrb[0].mxu0 }
  0xf6   :  { %v141_v12 = vpop.f32.mrb[1].mxu0  ;;  %v180_v14 = vadd.f32 %v264_v10, %v216_v11 }
  0xf7   :  { %v265_v13 = vpop.f32.mrb[2].mxu0  ;;  %v178_v17 = vadd.f32 %v216_v11, %v141_v12 }
  0xf8   :  { %v181_v15 = vadd.f32 %v265_v13, %v216_v11  ;;  %v144_v16 = vpop.f32.mrb[3].mxu0 }
  0xf9   :  { %v179_v18 = vadd.f32 %v216_v11, %v144_v16 }
  0xfa   :  { %v233_v19 = vpack.c.bf16 %v181_v15, %v180_v14 }
  0xfb   :  { %v228_v20 = vpack.c.bf16 %v179_v18, %v178_v17 }
  0xfc   :  { %235 = vst [vmem:[%s338_s3 + $0x8] sm:$0xff] %v233_v19  }
  0xfd   :  { %229 = vst [vmem:[%s338_s3] sm:$0xff] %v228_v20  }

// kernel: multi_task_model_forward.10
= control target key start
LH: loop header
LB: loop body
LE: loop exit
PB: predicated region body
PF: predicated region fallthrough
CT: control target
= control target key end

     0   :  { %v283_v0 = vmov 0.0   ;;  %vm284_vm0 = vmmov 0   ;;  %s354_s1 = inlined_call_operand.vmem [shape: bf16[128,128], index: 1, kind: input, shape index: {}]   ;;  %s355_s0 = inlined_call_operand.vmem [shape: bf16[48,128], index: 0, kind: input, shape index: {}]   ;;  %s356_s2 = inlined_call_operand.vmem [shape: f32[48,128], index: 2, kind: output, shape index: {}]  }
   0x1   :  { %254 = vmatprep.subr.bf16.mxu1 %v283_v0  ;;  %v272_v1 = vld [vmem:[%s354_s1] sm:$0xff]   ;;  %226 = vmatprep.subr.bf16.mxu0 %v283_v0  ;;  %v273_v2 = vld [vmem:[%s354_s1 + $0x8] sm:$0xff]   ;;  %v274_v3 = vld [vmem:[%s354_s1 + $0x10] sm:$0xff]  }
   0x2   :  { %246 = vmatprep.mubr.msk.bf16.mxu1 %vm284_vm0, %v283_v0  ;;  %242 = vmatprep.mubr.msk.bf16.mxu0 %vm284_vm0, %v283_v0  ;;  %v275_v4 = vld [vmem:[%s354_s1 + $0x18] sm:$0xff]   ;;  %v276_v5 = vld [vmem:[%s354_s1 + $0x20] sm:$0xff]   ;;  %v277_v6 = vld [vmem:[%s354_s1 + $0x28] sm:$0xff]  }
   0x3   :  { %262 = vmatpush3.bf16.msra.mxu1 %v272_v1  ;;  %227 = vmatpush3.bf16.msra.mxu0 %v272_v1  ;;  %v278_v7 = vld [vmem:[%s354_s1 + $0x30] sm:$0xff]   ;;  %v279_v8 = vld [vmem:[%s354_s1 + $0x38] sm:$0xff]   ;;  %v280_v9 = vld [vmem:[%s355_s0 + $0x8] sm:$0xff]  }
   0x4   :  { %255 = vmatprep.subr.bf16.mxu1 %v283_v0  ;;  %228 = vmatprep.subr.bf16.mxu0 %v283_v0  ;;  %v281_v10 = vld [vmem:[%s355_s0] sm:$0xff]   ;;  %v282_v11 = vld [vmem:[%s355_s0 + $0x10] sm:$0xff]  }
   0x7   :  { %263 = vmatpush3.bf16.msra.mxu1 %v273_v2  ;;  %229 = vmatpush3.bf16.msra.mxu0 %v273_v2 }
   0x8   :  { %256 = vmatprep.subr.bf16.mxu1 %v283_v0  ;;  %230 = vmatprep.subr.bf16.mxu0 %v283_v0 }
   0xb   :  { %264 = vmatpush3.bf16.msra.mxu1 %v274_v3  ;;  %231 = vmatpush3.bf16.msra.mxu0 %v274_v3 }
   0xc   :  { %257 = vmatprep.subr.bf16.mxu1 %v283_v0  ;;  %232 = vmatprep.subr.bf16.mxu0 %v283_v0 }
   0xf   :  { %265 = vmatpush3.bf16.msra.mxu1 %v275_v4  ;;  %233 = vmatpush3.bf16.msra.mxu0 %v275_v4 }
  0x10   :  { %258 = vmatprep.subr.bf16.mxu1 %v283_v0  ;;  %234 = vmatprep.subr.bf16.mxu0 %v283_v0 }
  0x13   :  { %266 = vmatpush3.bf16.msra.mxu1 %v276_v5  ;;  %235 = vmatpush3.bf16.msra.mxu0 %v276_v5 }
  0x14   :  { %259 = vmatprep.subr.bf16.mxu1 %v283_v0  ;;  %236 = vmatprep.subr.bf16.mxu0 %v283_v0 }
  0x17   :  { %267 = vmatpush3.bf16.msra.mxu1 %v277_v6  ;;  %237 = vmatpush3.bf16.msra.mxu0 %v277_v6 }
  0x18   :  { %260 = vmatprep.subr.bf16.mxu1 %v283_v0  ;;  %238 = vmatprep.subr.bf16.mxu0 %v283_v0 }
  0x1b   :  { %268 = vmatpush3.bf16.msra.mxu1 %v278_v7  ;;  %239 = vmatpush3.bf16.msra.mxu0 %v278_v7 }
  0x1c   :  { %261 = vmatprep.subr.bf16.mxu1 %v283_v0  ;;  %240 = vmatprep.subr.bf16.mxu0 %v283_v0 }
  0x1f   :  { %269 = vmatpush3.bf16.msra.mxu1 %v279_v8  ;;  %241 = vmatpush3.bf16.msra.mxu0 %v279_v8 }
  0x22   :  { %247 = vmatmul.mubr.bf16.vlgmr.msra.gmra.mrb[0].mxu1 %v280_v9  ;;  %243 = vmatmul.mubr.bf16.vlgmr.msra.gmra.mrb[0].mxu0 %v281_v10 }
  0x23   :  { %250 = vmatprep.mubr.msk.bf16.mxu1 %vm284_vm0, %v283_v0 }
  0x2a   :  { %251 = vmatmul.mubr.bf16.gmra.mrb[4].mxu1 %v282_v11 }
  0xf5   :  { %v158_v12 = vpop.f32.mrb[0].mxu1  ;;  %v150_v13 = vpop.f32.mrb[0].mxu0 }
  0xf6   :  { %196 = vst [vmem:[%s356_s2 + $0x10] sm:$0xff] %v158_v12  ;;  %v248_v14 = vpop.f32.mrb[1].mxu1  ;;  %194 = vst [vmem:[%s356_s2] sm:$0xff] %v150_v13  ;;  %v244_v15 = vpop.f32.mrb[1].mxu0 }
  0xf7   :  { %v161_v16 = vpop.f32.mrb[2].mxu1  ;;  %v153_v17 = vpop.f32.mrb[2].mxu0 }
  0xf8   :  { %197 = vst [vmem:[%s356_s2 + $0x18] sm:$0xff] %v161_v16  ;;  %v249_v18 = vpop.f32.mrb[3].mxu1  ;;  %195 = vst [vmem:[%s356_s2 + $0x8] sm:$0xff] %v153_v17  ;;  %v245_v19 = vpop.f32.mrb[3].mxu0 }
  0xfd   :  { %v166_v20 = vpop.f32.mrb[4].mxu1 }
  0xfe   :  { %198 = vst [vmem:[%s356_s2 + $0x20] sm:$0xff] %v166_v20  ;;  %v252_v21 = vpop.f32.mrb[5].mxu1 }
  0xff   :  { %v169_v22 = vpop.f32.mrb[6].mxu1 }
 0x100   :  { %199 = vst [vmem:[%s356_s2 + $0x28] sm:$0xff] %v169_v22  ;;  %v253_v23 = vpop.f32.mrb[7].mxu1 }

// kernel: multi_task_model_forward.11
= control target key start
LH: loop header
LB: loop body
LE: loop exit
PB: predicated region body
PF: predicated region fallthrough
CT: control target
= control target key end

     0   :  { %s719_s1 = inlined_call_operand.vmem [shape: bf16[128,128], index: 1, kind: input, shape index: {}]   ;;  %s720_s0 = inlined_call_operand.vmem [shape: bf16[192,128], index: 0, kind: input, shape index: {}]   ;;  %s721_s2 = inlined_call_operand.vmem [shape: f32[192,128], index: 2, kind: output, shape index: {}]  }
   0x1   :  { %v552_v0 = vld [vmem:[%s719_s1] sm:$0xff]   ;;  %v553_v1 = vld [vmem:[%s719_s1 + $0x8] sm:$0xff]   ;;  %v554_v2 = vld [vmem:[%s719_s1 + $0x10] sm:$0xff]  }
   0x2   :  { %496 = vmatprep.subr.bf16.mxu0 %v552_v0  ;;  %536 = vmatprep.subr.bf16.mxu1 %v552_v0  ;;  %v555_v3 = vld [vmem:[%s719_s1 + $0x18] sm:$0xff]   ;;  %v560_v4 = vld [vmem:[%s720_s0] sm:$0xff]   ;;  %v561_v5 = vld [vmem:[%s720_s0 + $0x30] sm:$0xff]  }
   0x3   :  { %497 = vmatpush3.bf16.msra.mxu0 %v552_v0  ;;  %544 = vmatpush3.bf16.msra.mxu1 %v552_v0  ;;  %v556_v6 = vld [vmem:[%s719_s1 + $0x20] sm:$0xff]   ;;  %v557_v7 = vld [vmem:[%s719_s1 + $0x28] sm:$0xff]   ;;  %v558_v8 = vld [vmem:[%s719_s1 + $0x30] sm:$0xff]  }
   0x4   :  { %498 = vmatprep.subr.bf16.mxu0 %v553_v1  ;;  %537 = vmatprep.subr.bf16.mxu1 %v553_v1  ;;  %v559_v9 = vld [vmem:[%s719_s1 + $0x38] sm:$0xff]   ;;  %v562_v10 = vld [vmem:[%s720_s0 + $0x8] sm:$0xff]   ;;  %v564_v12 = vld [vmem:[%s720_s0 + $0x10] sm:$0xff]  }
   0x5   :  { %512 = vmatprep.mubr.bf16.mxu0 %v560_v4  ;;  %524 = vmatprep.mubr.bf16.mxu1 %v561_v5  ;;  %v563_v11 = vld [vmem:[%s720_s0 + $0x38] sm:$0xff]   ;;  %v565_v13 = vld [vmem:[%s720_s0 + $0x40] sm:$0xff]   ;;  %v567_v15 = vld [vmem:[%s720_s0 + $0x48] sm:$0xff]  }
   0x6   :  { %v566_v14 = vld [vmem:[%s720_s0 + $0x18] sm:$0xff]   ;;  %v568_v16 = vld [vmem:[%s720_s0 + $0x20] sm:$0xff]   ;;  %v569_v17 = vld [vmem:[%s720_s0 + $0x50] sm:$0xff]  }
   0x7   :  { %499 = vmatpush3.bf16.msra.mxu0 %v553_v1  ;;  %545 = vmatpush3.bf16.msra.mxu1 %v553_v1  ;;  %v570_v18 = vld [vmem:[%s720_s0 + $0x28] sm:$0xff]   ;;  %v571_v19 = vld [vmem:[%s720_s0 + $0x58] sm:$0xff]  }
   0x8   :  { %500 = vmatprep.subr.bf16.mxu0 %v554_v2  ;;  %538 = vmatprep.subr.bf16.mxu1 %v554_v2 }
   0xb   :  { %501 = vmatpush3.bf16.msra.mxu0 %v554_v2  ;;  %546 = vmatpush3.bf16.msra.mxu1 %v554_v2 }
   0xc   :  { %502 = vmatprep.subr.bf16.mxu0 %v555_v3  ;;  %539 = vmatprep.subr.bf16.mxu1 %v555_v3 }
   0xf   :  { %503 = vmatpush3.bf16.msra.mxu0 %v555_v3  ;;  %547 = vmatpush3.bf16.msra.mxu1 %v555_v3 }
  0x10   :  { %504 = vmatprep.subr.bf16.mxu0 %v556_v6  ;;  %540 = vmatprep.subr.bf16.mxu1 %v556_v6 }
  0x13   :  { %505 = vmatpush3.bf16.msra.mxu0 %v556_v6  ;;  %548 = vmatpush3.bf16.msra.mxu1 %v556_v6 }
  0x14   :  { %506 = vmatprep.subr.bf16.mxu0 %v557_v7  ;;  %541 = vmatprep.subr.bf16.mxu1 %v557_v7 }
  0x17   :  { %507 = vmatpush3.bf16.msra.mxu0 %v557_v7  ;;  %549 = vmatpush3.bf16.msra.mxu1 %v557_v7 }
  0x18   :  { %508 = vmatprep.subr.bf16.mxu0 %v558_v8  ;;  %542 = vmatprep.subr.bf16.mxu1 %v558_v8 }
  0x1b   :  { %509 = vmatpush3.bf16.msra.mxu0 %v558_v8  ;;  %550 = vmatpush3.bf16.msra.mxu1 %v558_v8 }
  0x1c   :  { %510 = vmatprep.subr.bf16.mxu0 %v559_v9  ;;  %543 = vmatprep.subr.bf16.mxu1 %v559_v9 }
  0x1f   :  { %511 = vmatpush3.bf16.msra.mxu0 %v559_v9  ;;  %551 = vmatpush3.bf16.msra.mxu1 %v559_v9 }
  0x22   :  { %513 = vmatmul.mubr.bf16.vlgmr.msra.gmra.mrb[0].mxu0 %v562_v10  ;;  %525 = vmatmul.mubr.bf16.vlgmr.msra.gmra.mrb[0].mxu1 %v563_v11 }
  0x23   :  { %516 = vmatprep.mubr.bf16.mxu0 %v564_v12  ;;  %528 = vmatprep.mubr.bf16.mxu1 %v565_v13 }
  0x2a   :  { %517 = vmatmul.mubr.bf16.gmra.mrb[4].mxu0 %v566_v14  ;;  %529 = vmatmul.mubr.bf16.gmra.mrb[4].mxu1 %v567_v15 }
  0x2b   :  { %520 = vmatprep.mubr.bf16.mxu0 %v568_v16  ;;  %532 = vmatprep.mubr.bf16.mxu1 %v569_v17 }
  0x32   :  { %521 = vmatmul.mubr.bf16.gmra.mrb[8].mxu0 %v570_v18  ;;  %533 = vmatmul.mubr.bf16.gmra.mrb[8].mxu1 %v571_v19 }
  0xf5   :  { %v514_v20 = vpop.f32.mrb[0].mxu0  ;;  %v526_v21 = vpop.f32.mrb[0].mxu1 }
  0xf6   :  { %430 = vst [vmem:[%s721_s2 + $0x10] sm:$0xff] %v514_v20  ;;  %442 = vst [vmem:[%s721_s2 + $0x70] sm:$0xff] %v526_v21  ;;  %v258_v22 = vpop.f32.mrb[1].mxu0  ;;  %v306_v23 = vpop.f32.mrb[1].mxu1 }
  0xf7   :  { %428 = vst [vmem:[%s721_s2] sm:$0xff] %v258_v22  ;;  %440 = vst [vmem:[%s721_s2 + $0x60] sm:$0xff] %v306_v23  ;;  %v515_v24 = vpop.f32.mrb[2].mxu0  ;;  %v527_v25 = vpop.f32.mrb[2].mxu1 }
  0xf8   :  { %431 = vst [vmem:[%s721_s2 + $0x18] sm:$0xff] %v515_v24  ;;  %443 = vst [vmem:[%s721_s2 + $0x78] sm:$0xff] %v527_v25  ;;  %v261_v26 = vpop.f32.mrb[3].mxu0  ;;  %v309_v27 = vpop.f32.mrb[3].mxu1 }
  0xf9   :  { %429 = vst [vmem:[%s721_s2 + $0x8] sm:$0xff] %v261_v26  ;;  %441 = vst [vmem:[%s721_s2 + $0x68] sm:$0xff] %v309_v27 }
  0xfd   :  { %v518_v28 = vpop.f32.mrb[4].mxu0  ;;  %v530_v29 = vpop.f32.mrb[4].mxu1 }
  0xfe   :  { %434 = vst [vmem:[%s721_s2 + $0x30] sm:$0xff] %v518_v28  ;;  %446 = vst [vmem:[%s721_s2 + $0x90] sm:$0xff] %v530_v29  ;;  %v274_v30 = vpop.f32.mrb[5].mxu0  ;;  %v322_v31 = vpop.f32.mrb[5].mxu1 }
  0xff   :  { %432 = vst [vmem:[%s721_s2 + $0x20] sm:$0xff] %v274_v30  ;;  %444 = vst [vmem:[%s721_s2 + $0x80] sm:$0xff] %v322_v31  ;;  %v519_v32 = vpop.f32.mrb[6].mxu0  ;;  %v531_v33 = vpop.f32.mrb[6].mxu1 }
 0x100   :  { %435 = vst [vmem:[%s721_s2 + $0x38] sm:$0xff] %v519_v32  ;;  %447 = vst [vmem:[%s721_s2 + $0x98] sm:$0xff] %v531_v33  ;;  %v277_v34 = vpop.f32.mrb[7].mxu0  ;;  %v325_v35 = vpop.f32.mrb[7].mxu1 }
 0x101   :  { %433 = vst [vmem:[%s721_s2 + $0x28] sm:$0xff] %v277_v34  ;;  %445 = vst [vmem:[%s721_s2 + $0x88] sm:$0xff] %v325_v35 }
 0x105   :  { %v522_v36 = vpop.f32.mrb[8].mxu0  ;;  %v534_v37 = vpop.f32.mrb[8].mxu1 }
 0x106   :  { %438 = vst [vmem:[%s721_s2 + $0x50] sm:$0xff] %v522_v36  ;;  %450 = vst [vmem:[%s721_s2 + $0xb0] sm:$0xff] %v534_v37  ;;  %v290_v38 = vpop.f32.mrb[9].mxu0  ;;  %v338_v39 = vpop.f32.mrb[9].mxu1 }
 0x107   :  { %436 = vst [vmem:[%s721_s2 + $0x40] sm:$0xff] %v290_v38  ;;  %448 = vst [vmem:[%s721_s2 + $0xa0] sm:$0xff] %v338_v39  ;;  %v523_v40 = vpop.f32.mrb[10].mxu0  ;;  %v535_v41 = vpop.f32.mrb[10].mxu1 }
 0x108   :  { %439 = vst [vmem:[%s721_s2 + $0x58] sm:$0xff] %v523_v40  ;;  %451 = vst [vmem:[%s721_s2 + $0xb8] sm:$0xff] %v535_v41  ;;  %v293_v42 = vpop.f32.mrb[11].mxu0  ;;  %v341_v43 = vpop.f32.mrb[11].mxu1 }
 0x109   :  { %437 = vst [vmem:[%s721_s2 + $0x48] sm:$0xff] %v293_v42  ;;  %449 = vst [vmem:[%s721_s2 + $0xa8] sm:$0xff] %v341_v43 }

</bundles_post_ra>
